<compile_context>
chip_gen: v6e
topology: v6e:2x2x1
jax: 0.10.0
libtpu: 0.0.40
codegen_flags: <defaults>
</compile_context>

<pallas_src>
import functools

import jax
import jax.numpy as jnp
from jax.experimental import pallas as pl
from jax.experimental.pallas import tpu as pltpu

_LANE = 128


def _conv_bn_relu_kernel(x_ref, w_ref, scale_ref, shift_ref, o_ref, *,
                         KH, KW, OH, OW, stride, apply_relu):
    # x_ref:     (1, H_pad, W_pad, Cin)     padded NHWC image (bf16)
    # w_ref:     (KH*KW, Cin, Cout_pad)     per-tap weight matrices (bf16)
    # scale_ref: (1, Cout_pad)              BN scale = gamma / sqrt(var + eps)
    # shift_ref: (1, Cout_pad)              BN shift = beta - mean * scale
    # o_ref:     (1, OH*OW, Cout_pad)       lane-dense output slab
    x = x_ref[0]                       # (H_pad, W_pad, Cin) value in vregs
    cin = x.shape[-1]
    cout_pad = o_ref.shape[-1]

    acc = jnp.zeros((OH * OW, cout_pad), jnp.float32)
    for kh in range(KH):
        for kw in range(KW):
            if stride == 1:
                tap = x[kh:kh + OH, kw:kw + OW, :]
            else:
                tap = jax.lax.slice(
                    x,
                    (kh, kw, 0),
                    (kh + (OH - 1) * stride + 1,
                     kw + (OW - 1) * stride + 1,
                     cin),
                    (stride, stride, 1))
            tap = tap.reshape(OH * OW, cin)                   # collapse spatial
            acc = acc + jnp.dot(tap, w_ref[kh * KW + kw],
                                preferred_element_type=jnp.float32)

    y = acc * scale_ref[...] + shift_ref[...]
    if apply_relu:
        y = jnp.maximum(y, 0.0)
    o_ref[0] = y.astype(o_ref.dtype)


def basic_conv(x_nchw, weight, gamma, beta, running_mean, running_var,
               *, stride=1, padding=0, eps=1e-5, relu=True, bn=True):
    """Forward of BasicConv.  x_nchw: (N, Cin, H, W), weight: (Cout, Cin, KH, KW)."""
    N, Cin, H, W = x_nchw.shape
    Cout, Cin_w, KH, KW = weight.shape
    assert Cin == Cin_w

    OH = (H + 2 * padding - KH) // stride + 1
    OW = (W + 2 * padding - KW) // stride + 1
    H_pad, W_pad = H + 2 * padding, W + 2 * padding
    Cout_pad = ((Cout + _LANE - 1) // _LANE) * _LANE

    # ---- glue: NHWC + spatial padding, bf16 activations ----------------------
    x = jnp.transpose(x_nchw, (0, 2, 3, 1)).astype(jnp.bfloat16)
    xp = jnp.pad(x, ((0, 0), (padding, padding), (padding, padding), (0, 0)))

    # per-tap weights: (KH*KW, Cin, Cout_pad), padded Cout columns are zero
    w = jnp.transpose(weight, (2, 3, 1, 0)).reshape(KH * KW, Cin, Cout)
    w = jnp.pad(w, ((0, 0), (0, 0), (0, Cout_pad - Cout))).astype(jnp.bfloat16)

    # ---- fold BN (inference semantics, running stats) into scale/shift -------
    if bn:
        scale = gamma / jnp.sqrt(running_var + eps)
        shift = beta - running_mean * scale
    else:
        scale = jnp.ones((Cout,), jnp.float32)
        shift = jnp.zeros((Cout,), jnp.float32)
    scale = jnp.pad(scale.astype(jnp.float32), (0, Cout_pad - Cout)).reshape(1, Cout_pad)
    shift = jnp.pad(shift.astype(jnp.float32), (0, Cout_pad - Cout)).reshape(1, Cout_pad)

    kernel = functools.partial(_conv_bn_relu_kernel, KH=KH, KW=KW, OH=OH, OW=OW,
                               stride=stride, apply_relu=relu)

    out = pl.pallas_call(
        kernel,
        out_shape=jax.ShapeDtypeStruct((N, OH * OW, Cout_pad), jnp.float32),
        grid_spec=pltpu.PrefetchScalarGridSpec(
            num_scalar_prefetch=0,
            grid=(N,),
            in_specs=[
                pl.BlockSpec((1, H_pad, W_pad, Cin), lambda n: (n, 0, 0, 0)),
                pl.BlockSpec((KH * KW, Cin, Cout_pad), lambda n: (0, 0, 0)),
                pl.BlockSpec((1, Cout_pad), lambda n: (0, 0)),
                pl.BlockSpec((1, Cout_pad), lambda n: (0, 0)),
            ],
            out_specs=pl.BlockSpec((1, OH * OW, Cout_pad), lambda n: (n, 0, 0)),
        ),
        compiler_params=pltpu.CompilerParams(
            dimension_semantics=("parallel",),
            vmem_limit_bytes=32 * 1024 * 1024),
    )(xp, w, scale, shift)

    out = out[:, :, :Cout].reshape(N, OH, OW, Cout)
    return jnp.transpose(out, (0, 3, 1, 2))  # back to NCHW


def _reference(x_nchw, weight, gamma, beta, mean, var, *, stride, padding,
               eps=1e-5, relu=True):
    y = jax.lax.conv_general_dilated(
        x_nchw, weight, window_strides=(stride, stride),
        padding=[(padding, padding), (padding, padding)],
        dimension_numbers=("NCHW", "OIHW", "NCHW"))
    scale = (gamma / jnp.sqrt(var + eps)).reshape(1, -1, 1, 1)
    shift = (beta - mean * gamma / jnp.sqrt(var + eps)).reshape(1, -1, 1, 1)
    y = y * scale + shift
    if relu:
        y = jnp.maximum(y, 0.0)
    return y


if __name__ == "__main__":
    key = jax.random.PRNGKey(0)
    k1, k2, k3, k4, k5, k6 = jax.random.split(key, 6)

    # BasicConv(in_planes=4, out_planes=8, kernel_size=3, stride=1, padding=1)
    N, Cin, H, W = 2, 4, 16, 16
    Cout, KH, KW = 8, 3, 3
    stride, padding = 1, 1

    x = jax.random.normal(k1, (N, Cin, H, W), jnp.float32)
    weight = jax.random.normal(k2, (Cout, Cin, KH, KW), jnp.float32) * 0.1
    gamma = 1.0 + 0.1 * jax.random.normal(k3, (Cout,), jnp.float32)
    beta = 0.1 * jax.random.normal(k4, (Cout,), jnp.float32)
    running_mean = 0.1 * jax.random.normal(k5, (Cout,), jnp.float32)
    running_var = jnp.abs(1.0 + 0.1 * jax.random.normal(k6, (Cout,), jnp.float32))

    out = basic_conv(x, weight, gamma, beta, running_mean, running_var,
                     stride=stride, padding=padding, relu=True, bn=True)
    out = jax.block_until_ready(out)

    ref = _reference(x, weight, gamma, beta, running_mean, running_var,
                     stride=stride, padding=padding, relu=True)
    assert out.shape == (N, Cout, H, W)
    # bf16 activations/weights with f32 accumulation -> looser tolerance.
    assert jnp.allclose(out, ref, atol=3e-2, rtol=3e-2)
    print("KERNEL_OK")
</pallas_src>

<mosaic_0001>
module attributes {stable_mosaic.version = 11 : i64} {
  func.func @_conv_bn_relu_kernel(%arg0: i32, %arg1: memref<1x18x18x4xbf16, #tpu.memory_space<vmem>>, %arg2: memref<9x4x128xbf16, #tpu.memory_space<vmem>>, %arg3: memref<1x128xf32, #tpu.memory_space<vmem>>, %arg4: memref<1x128xf32, #tpu.memory_space<vmem>>, %arg5: memref<1x256x128xf32, #tpu.memory_space<vmem>>) attributes {dimension_semantics = [#tpu.dimension_semantics<parallel>], iteration_bounds = array<i64: 2>, scalar_prefetch = 0 : i64, scratch_operands = 0 : i64, tpu.core_type = #tpu.core_type<tc>, window_params = [{transform_indices = @transform_0, window_bounds = array<i64: 1, 18, 18, 4>}, {pipeline_mode = #tpu.pipeline_mode<synchronous>, transform_indices = @transform_1, window_bounds = array<i64: 9, 4, 128>}, {pipeline_mode = #tpu.pipeline_mode<synchronous>, transform_indices = @transform_2, window_bounds = array<i64: 1, 128>}, {pipeline_mode = #tpu.pipeline_mode<synchronous>, transform_indices = @transform_3, window_bounds = array<i64: 1, 128>}, {transform_indices = @transform_4, window_bounds = array<i64: 1, 256, 128>}]} {
    %c0 = arith.constant 0 : index
    %c0_0 = arith.constant 0 : index
    %c0_1 = arith.constant 0 : index
    %c0_2 = arith.constant 0 : index
    %0 = vector.load %arg1[%c0, %c0_0, %c0_1, %c0_2] : memref<1x18x18x4xbf16, #tpu.memory_space<vmem>>, vector<1x18x18x4xbf16>
    %1 = vector.shape_cast %0 : vector<1x18x18x4xbf16> to vector<18x18x4xbf16>
    %cst = arith.constant 0.000000e+00 : f32
    %2 = vector.broadcast %cst : f32 to vector<256x128xf32>
    %3 = vector.extract_strided_slice %1 {offsets = [0, 0, 0], sizes = [16, 16, 4], strides = [1, 1, 1]} : vector<18x18x4xbf16> to vector<16x16x4xbf16>
    %4 = vector.shape_cast %3 : vector<16x16x4xbf16> to vector<256x4xbf16>
    %c0_3 = arith.constant 0 : index
    %c0_4 = arith.constant 0 : index
    %c0_5 = arith.constant 0 : index
    %5 = vector.load %arg2[%c0_3, %c0_4, %c0_5] : memref<9x4x128xbf16, #tpu.memory_space<vmem>>, vector<1x4x128xbf16>
    %6 = vector.shape_cast %5 : vector<1x4x128xbf16> to vector<4x128xbf16>
    %cst_6 = arith.constant dense<0.000000e+00> : vector<256x128xf32>
    %7 = tpu.matmul %4, %6, %cst_6 {dimension_numbers = #tpu.dot_dimension_numbers<[1], [0], [0], [1], [0, 0, 1, 1], [], []>} : vector<256x4xbf16>, vector<4x128xbf16>, vector<256x128xf32> -> vector<256x128xf32>
    %8 = arith.addf %2, %7 : vector<256x128xf32>
    %9 = vector.extract_strided_slice %1 {offsets = [0, 1, 0], sizes = [16, 16, 4], strides = [1, 1, 1]} : vector<18x18x4xbf16> to vector<16x16x4xbf16>
    %10 = vector.shape_cast %9 : vector<16x16x4xbf16> to vector<256x4xbf16>
    %c1 = arith.constant 1 : index
    %c0_7 = arith.constant 0 : index
    %c0_8 = arith.constant 0 : index
    %11 = vector.load %arg2[%c1, %c0_7, %c0_8] : memref<9x4x128xbf16, #tpu.memory_space<vmem>>, vector<1x4x128xbf16>
    %12 = vector.shape_cast %11 : vector<1x4x128xbf16> to vector<4x128xbf16>
    %cst_9 = arith.constant dense<0.000000e+00> : vector<256x128xf32>
    %13 = tpu.matmul %10, %12, %cst_9 {dimension_numbers = #tpu.dot_dimension_numbers<[1], [0], [0], [1], [0, 0, 1, 1], [], []>} : vector<256x4xbf16>, vector<4x128xbf16>, vector<256x128xf32> -> vector<256x128xf32>
    %14 = arith.addf %8, %13 : vector<256x128xf32>
    %15 = vector.extract_strided_slice %1 {offsets = [0, 2, 0], sizes = [16, 16, 4], strides = [1, 1, 1]} : vector<18x18x4xbf16> to vector<16x16x4xbf16>
    %16 = vector.shape_cast %15 : vector<16x16x4xbf16> to vector<256x4xbf16>
    %c2 = arith.constant 2 : index
    %c0_10 = arith.constant 0 : index
    %c0_11 = arith.constant 0 : index
    %17 = vector.load %arg2[%c2, %c0_10, %c0_11] : memref<9x4x128xbf16, #tpu.memory_space<vmem>>, vector<1x4x128xbf16>
    %18 = vector.shape_cast %17 : vector<1x4x128xbf16> to vector<4x128xbf16>
    %cst_12 = arith.constant dense<0.000000e+00> : vector<256x128xf32>
    %19 = tpu.matmul %16, %18, %cst_12 {dimension_numbers = #tpu.dot_dimension_numbers<[1], [0], [0], [1], [0, 0, 1, 1], [], []>} : vector<256x4xbf16>, vector<4x128xbf16>, vector<256x128xf32> -> vector<256x128xf32>
    %20 = arith.addf %14, %19 : vector<256x128xf32>
    %21 = vector.extract_strided_slice %1 {offsets = [1, 0, 0], sizes = [16, 16, 4], strides = [1, 1, 1]} : vector<18x18x4xbf16> to vector<16x16x4xbf16>
    %22 = vector.shape_cast %21 : vector<16x16x4xbf16> to vector<256x4xbf16>
    %c3 = arith.constant 3 : index
    %c0_13 = arith.constant 0 : index
    %c0_14 = arith.constant 0 : index
    %23 = vector.load %arg2[%c3, %c0_13, %c0_14] : memref<9x4x128xbf16, #tpu.memory_space<vmem>>, vector<1x4x128xbf16>
    %24 = vector.shape_cast %23 : vector<1x4x128xbf16> to vector<4x128xbf16>
    %cst_15 = arith.constant dense<0.000000e+00> : vector<256x128xf32>
    %25 = tpu.matmul %22, %24, %cst_15 {dimension_numbers = #tpu.dot_dimension_numbers<[1], [0], [0], [1], [0, 0, 1, 1], [], []>} : vector<256x4xbf16>, vector<4x128xbf16>, vector<256x128xf32> -> vector<256x128xf32>
    %26 = arith.addf %20, %25 : vector<256x128xf32>
    %27 = vector.extract_strided_slice %1 {offsets = [1, 1, 0], sizes = [16, 16, 4], strides = [1, 1, 1]} : vector<18x18x4xbf16> to vector<16x16x4xbf16>
    %28 = vector.shape_cast %27 : vector<16x16x4xbf16> to vector<256x4xbf16>
    %c4 = arith.constant 4 : index
    %c0_16 = arith.constant 0 : index
    %c0_17 = arith.constant 0 : index
    %29 = vector.load %arg2[%c4, %c0_16, %c0_17] : memref<9x4x128xbf16, #tpu.memory_space<vmem>>, vector<1x4x128xbf16>
    %30 = vector.shape_cast %29 : vector<1x4x128xbf16> to vector<4x128xbf16>
    %cst_18 = arith.constant dense<0.000000e+00> : vector<256x128xf32>
    %31 = tpu.matmul %28, %30, %cst_18 {dimension_numbers = #tpu.dot_dimension_numbers<[1], [0], [0], [1], [0, 0, 1, 1], [], []>} : vector<256x4xbf16>, vector<4x128xbf16>, vector<256x128xf32> -> vector<256x128xf32>
    %32 = arith.addf %26, %31 : vector<256x128xf32>
    %33 = vector.extract_strided_slice %1 {offsets = [1, 2, 0], sizes = [16, 16, 4], strides = [1, 1, 1]} : vector<18x18x4xbf16> to vector<16x16x4xbf16>
    %34 = vector.shape_cast %33 : vector<16x16x4xbf16> to vector<256x4xbf16>
    %c5 = arith.constant 5 : index
    %c0_19 = arith.constant 0 : index
    %c0_20 = arith.constant 0 : index
    %35 = vector.load %arg2[%c5, %c0_19, %c0_20] : memref<9x4x128xbf16, #tpu.memory_space<vmem>>, vector<1x4x128xbf16>
    %36 = vector.shape_cast %35 : vector<1x4x128xbf16> to vector<4x128xbf16>
    %cst_21 = arith.constant dense<0.000000e+00> : vector<256x128xf32>
    %37 = tpu.matmul %34, %36, %cst_21 {dimension_numbers = #tpu.dot_dimension_numbers<[1], [0], [0], [1], [0, 0, 1, 1], [], []>} : vector<256x4xbf16>, vector<4x128xbf16>, vector<256x128xf32> -> vector<256x128xf32>
    %38 = arith.addf %32, %37 : vector<256x128xf32>
    %39 = vector.extract_strided_slice %1 {offsets = [2, 0, 0], sizes = [16, 16, 4], strides = [1, 1, 1]} : vector<18x18x4xbf16> to vector<16x16x4xbf16>
    %40 = vector.shape_cast %39 : vector<16x16x4xbf16> to vector<256x4xbf16>
    %c6 = arith.constant 6 : index
    %c0_22 = arith.constant 0 : index
    %c0_23 = arith.constant 0 : index
    %41 = vector.load %arg2[%c6, %c0_22, %c0_23] : memref<9x4x128xbf16, #tpu.memory_space<vmem>>, vector<1x4x128xbf16>
    %42 = vector.shape_cast %41 : vector<1x4x128xbf16> to vector<4x128xbf16>
    %cst_24 = arith.constant dense<0.000000e+00> : vector<256x128xf32>
    %43 = tpu.matmul %40, %42, %cst_24 {dimension_numbers = #tpu.dot_dimension_numbers<[1], [0], [0], [1], [0, 0, 1, 1], [], []>} : vector<256x4xbf16>, vector<4x128xbf16>, vector<256x128xf32> -> vector<256x128xf32>
    %44 = arith.addf %38, %43 : vector<256x128xf32>
    %45 = vector.extract_strided_slice %1 {offsets = [2, 1, 0], sizes = [16, 16, 4], strides = [1, 1, 1]} : vector<18x18x4xbf16> to vector<16x16x4xbf16>
    %46 = vector.shape_cast %45 : vector<16x16x4xbf16> to vector<256x4xbf16>
    %c7 = arith.constant 7 : index
    %c0_25 = arith.constant 0 : index
    %c0_26 = arith.constant 0 : index
    %47 = vector.load %arg2[%c7, %c0_25, %c0_26] : memref<9x4x128xbf16, #tpu.memory_space<vmem>>, vector<1x4x128xbf16>
    %48 = vector.shape_cast %47 : vector<1x4x128xbf16> to vector<4x128xbf16>
    %cst_27 = arith.constant dense<0.000000e+00> : vector<256x128xf32>
    %49 = tpu.matmul %46, %48, %cst_27 {dimension_numbers = #tpu.dot_dimension_numbers<[1], [0], [0], [1], [0, 0, 1, 1], [], []>} : vector<256x4xbf16>, vector<4x128xbf16>, vector<256x128xf32> -> vector<256x128xf32>
    %50 = arith.addf %44, %49 : vector<256x128xf32>
    %51 = vector.extract_strided_slice %1 {offsets = [2, 2, 0], sizes = [16, 16, 4], strides = [1, 1, 1]} : vector<18x18x4xbf16> to vector<16x16x4xbf16>
    %52 = vector.shape_cast %51 : vector<16x16x4xbf16> to vector<256x4xbf16>
    %c8 = arith.constant 8 : index
    %c0_28 = arith.constant 0 : index
    %c0_29 = arith.constant 0 : index
    %53 = vector.load %arg2[%c8, %c0_28, %c0_29] : memref<9x4x128xbf16, #tpu.memory_space<vmem>>, vector<1x4x128xbf16>
    %54 = vector.shape_cast %53 : vector<1x4x128xbf16> to vector<4x128xbf16>
    %cst_30 = arith.constant dense<0.000000e+00> : vector<256x128xf32>
    %55 = tpu.matmul %52, %54, %cst_30 {dimension_numbers = #tpu.dot_dimension_numbers<[1], [0], [0], [1], [0, 0, 1, 1], [], []>} : vector<256x4xbf16>, vector<4x128xbf16>, vector<256x128xf32> -> vector<256x128xf32>
    %56 = arith.addf %50, %55 : vector<256x128xf32>
    %c0_31 = arith.constant 0 : index
    %c0_32 = arith.constant 0 : index
    %57 = vector.load %arg3[%c0_31, %c0_32] : memref<1x128xf32, #tpu.memory_space<vmem>>, vector<1x128xf32>
    %58 = vector.broadcast %57 : vector<1x128xf32> to vector<256x128xf32>
    %59 = arith.mulf %56, %58 : vector<256x128xf32>
    %c0_33 = arith.constant 0 : index
    %c0_34 = arith.constant 0 : index
    %60 = vector.load %arg4[%c0_33, %c0_34] : memref<1x128xf32, #tpu.memory_space<vmem>>, vector<1x128xf32>
    %61 = vector.broadcast %60 : vector<1x128xf32> to vector<256x128xf32>
    %62 = arith.addf %59, %61 : vector<256x128xf32>
    %cst_35 = arith.constant 0.000000e+00 : f32
    %63 = vector.broadcast %cst_35 : f32 to vector<256x128xf32>
    %64 = arith.maximumf %62, %63 : vector<256x128xf32>
    %c0_36 = arith.constant 0 : index
    %c0_37 = arith.constant 0 : index
    %c0_38 = arith.constant 0 : index
    %65 = vector.load %arg5[%c0_36, %c0_37, %c0_38] : memref<1x256x128xf32, #tpu.memory_space<vmem>>, vector<1x256x128xf32>
    %66 = vector.shape_cast %65 : vector<1x256x128xf32> to vector<256x128xf32>
    %67 = vector.shape_cast %64 : vector<256x128xf32> to vector<1x256x128xf32>
    tpu.vector_store %arg5[%c0_36, %c0_37, %c0_38], %67 {strides = array<i32>} : memref<1x256x128xf32, #tpu.memory_space<vmem>>, vector<1x256x128xf32>,
    return
  }
  func.func @transform_0(%arg0: i32) -> (i32, i32, i32, i32) {
    %c0_i32 = arith.constant 0 : i32
    %c0_i32_0 = arith.constant 0 : i32
    %c0_i32_1 = arith.constant 0 : i32
    %c0_i32_2 = arith.constant 0 : i32
    return %arg0, %c0_i32, %c0_i32_0, %c0_i32_1 : i32, i32, i32, i32
  }
  func.func @transform_1(%arg0: i32) -> (i32, i32, i32) {
    %c0_i32 = arith.constant 0 : i32
    %c0_i32_0 = arith.constant 0 : i32
    %c0_i32_1 = arith.constant 0 : i32
    %c0_i32_2 = arith.constant 0 : i32
    return %c0_i32, %c0_i32_0, %c0_i32_1 : i32, i32, i32
  }
  func.func @transform_2(%arg0: i32) -> (i32, i32) {
    %c0_i32 = arith.constant 0 : i32
    %c0_i32_0 = arith.constant 0 : i32
    %c0_i32_1 = arith.constant 0 : i32
    return %c0_i32, %c0_i32_0 : i32, i32
  }
  func.func @transform_3(%arg0: i32) -> (i32, i32) {
    %c0_i32 = arith.constant 0 : i32
    %c0_i32_0 = arith.constant 0 : i32
    %c0_i32_1 = arith.constant 0 : i32
    return %c0_i32, %c0_i32_0 : i32, i32
  }
  func.func @transform_4(%arg0: i32) -> (i32, i32, i32) {
    %c0_i32 = arith.constant 0 : i32
    %c0_i32_0 = arith.constant 0 : i32
    %c0_i32_1 = arith.constant 0 : i32
    return %arg0, %c0_i32, %c0_i32_0 : i32, i32, i32
  }
}

</mosaic_0001>

<bundles_post_ra>
// kernel: tpu_custom_call.1
= control target key start
LH: loop header
LB: loop body
LE: loop exit
PB: predicated region body
PF: predicated region fallthrough
CT: control target
= control target key end

     0   :  { %9 = vsyncpa [#allocation3], 0  ;;  %s5620_s0 = inlined_call_operand.vmem [shape: bf16[2,18,18,4], index: 0, kind: input, shape index: {}]   ;;  %s5621_s1 = inlined_call_operand.vmem [shape: bf16[9,4,128], index: 1, kind: input, shape index: {}]   ;;  %s5622_s2 = inlined_call_operand.vmem [shape: f32[1,128], index: 2, kind: input, shape index: {}]   ;;  %s5623_s3 = inlined_call_operand.vmem [shape: f32[1,128], index: 3, kind: input, shape index: {}]   ;;  %s5624_s4 = inlined_call_operand.hbm [shape: f32[2,256,128], index: 4, kind: output, shape index: {}]  }
   0x1   :  { %11 = vsyncpa [#allocation3 + $0x1], 0  ;;  %s3989_s15 = smov 0   ;;  %s3991_s16 = smov 0  }
   0x2   :  { %s3993_s17 = smov 0   ;;  %s3995_s18 = smov 0  }
   0x3 LB: > { %s4010_s19 = sadd.s32 4294967295, %s3959_s18   ;;  %s3130_s20 = sadd.s32 4294967294, %s3959_s18   ;;  %s3959_s18 = sphi %s3995_s18, %s5830_s18   ;;  %s3955_s17 = sphi %s3993_s17, %s5829_s17   ;;  %s3951_s16 = sphi %s3991_s16, %s5828_s16   ;;  %s3947_s15 = sphi %s3989_s15, %s5827_s15  }
   0x4   : > { %s4014_s21 = sadd.s32 1, %s3959_s18   ;;  %s113_s22 = sadd.s32 1, %s3955_s17 }
   0x5   : > { %s110_s23 = ssub.s32 %s3959_s18, %s4014_s21  ;;  %p123_p0 = scmp.ne.s32.totalorder %s3955_s17, %s3951_s16 }
   0x6   : > { %p111_p1 = scmp.eq.s32.totalorder %s110_s23, 0  ;;  %p124_p2 = scmp.eq.s32.totalorder %s4010_s19, 1 }
   0x7   : > { %p129_p3 = scmp.ne.s32.totalorder %s3951_s16, %s3947_s15  ;;  %p130_p4 = scmp.eq.s32.totalorder %s3130_s20, 1 }
   0x8   : > { %s4025_s24 = scalar_select %p111_p1, %s3955_s17, %s113_s22  }
   0x9   : > { %p4027_p5 = por %p124_p2, %p123_p0  ;;  %p4031_p6 = por %p130_p4, %p129_p3 }
   0xa   : > { %p3133_p7 = scmp.ge.s32.totalorder %s3959_s18, 1  ;;  %p165_p8 = scmp.lt.s32.totalorder %s3959_s18, 3 }
   0xc   : > { %p166_p9 = pnand %p3133_p7, %p165_p8 }
   0xe   : > { %169 = sbr.rel (%p166_p9) target bundleno = 580 (0x244), region = 36 }
  0x13   : > { %v3136_v0 = vld [vmem:[%s5621_s1 + $0x2] sm:$0x3]  ;;  %vm738_vm0 = vcmask 1041408   ;;  %p191_p10 = scmp.lt.s32.totalorder %s4010_s19, 1  ;;  %v251_v2 = vld [vmem:[%s5621_s1] sm:$0x3] }
  0x14   : > { %3830 = vmatprep.subr.msk.bf16.mxu1 %vm738_vm0, %v3136_v0  ;;  %3829 = vmatprep.subr.msk.bf16.mxu0 %vm738_vm0, %v3136_v0  ;;  %v740_v1 = vsel %vm738_vm0, %v3136_v0, 0  ;;  %v3217_v3 = vld [vmem:[%s5621_s1 + $0x4] sm:$0x3]  ;;  %vm252_vm1 = vsmask.f32 3328  ;;  %v4059_v4 = vsel %vm738_vm0, %v251_v2, 0 }
  0x15   : > { %3828 = vmatpush3.bf16.msra.mxu1 %v740_v1  ;;  %3522 = vmatpush3.bf16.msra.mxu0 %v740_v1  ;;  %s192_s5 = scalar_select %p191_p10, %s4010_s19, 1  ;;  %vm253_vm2 = vsmask.f32 7440  ;;  %v4062_v5 = vsel %vm738_vm0, %v3217_v3, 0  ;;  %vm689_vm3 = vcmask 31744   ;;  %v5670_v32 = vmov 0 }
  0x16   : > { %3831 = vmatprep.subr.msk.bf16.mxu1 %vm738_vm0, %v251_v2  ;;  %3832 = vmatprep.subr.msk.bf16.mxu0 %vm738_vm0, %v3217_v3  ;;  %vm4101_vm4 = vmor %vm252_vm1, %vm253_vm2  ;;  %vm1211_vm5 = vcmask 1042432   ;;  %vm1212_vm6 = vcmask 1046532   ;;  %s188_s7 = sand.u32 1, %s3951_s16   ;;  %s3367_s14 = sshll.u32 %s4010_s19, 12 }
  0x17   : > { %s3839_s8 = smul.u32 216, %s192_s5  ;;  %v5671_v32 = vsel %vm4101_vm4, 4294967295, %v5670_v32  ;;  %vm4424_vm7 = vmor %vm1211_vm5, %vm1212_vm6  ;;  %s3134_s12 = sshll.u32 %s188_s7, 8 }
  0x18   : > { %5672 = vst [vmem:[#allocation5_spill] sm:$0xff] %v5671_v32  ;;  %s5405_s13 = scalar_lea.vmem [#allocation2], %s3134_s12  ;;  %s5572_s27 = scalar_lea.hbm %s5624_s4, %s3367_s14 }
  0x19   : > { %s4056_s11 = scalar_lea.vmem %s5620_s0, %s3839_s8  ;;  %s3068_s20 = sshll.u32 %s5405_s13, 4  ;;  %s5574_s20 = int_to_ptr.vmem [resolvable:$true] %s3068_s20 }
  0x1a   : > { %v4065_v6 = vld [vmem:[%s4056_s11] sm:$0xf]  ;;  %v4068_v7 = vld [vmem:[%s4056_s11 + $0x4] sm:$0xf]  ;;  %v4071_v8 = vld [vmem:[%s4056_s11 + $0x8] sm:$0x1] }
  0x1b   : > { %v256_v9 = vshrl.u32 %v4065_v6, 16  ;;  %v259_v10 = vshll.u32 %v4065_v6, 16  ;;  %v265_v11 = vshll.u32 %v4068_v7, 16  ;;  %v269_v12 = vshrl.u32 %v4068_v7, 16  ;;  %v4078_v13 = vld [vmem:[%s4056_s11 + $0x60] sm:$0xf] }
  0x1c   : > { %v275_v14 = vshll.u32 %v4071_v8, 16  ;;  %v4083_v16 = vld [vmem:[%s4056_s11 + $0x64] sm:$0xf]  ;;  %v4086_v17 = vld [vmem:[%s4056_s11 + $0x68] sm:$0x1]  ;;  %v448_v23 = vshrl.u32 %v4078_v13, 16 }
  0x1d   : > { %v258_v18 = vrot.slane %v256_v9, 4  ;;  %v261_v19 = vrot.slane %v259_v10, 5  ;;  %v267_v20 = vrot.slane %v265_v11, 5  ;;  %v271_v21 = vrot.slane %v269_v12, 4  ;;  %v4094_v30 = vld [vmem:[%s4056_s11 + $0xc] sm:$0xf] }
  0x1e   : > { %v277_v22 = vrot.slane %v275_v14, 5  ;;  %v451_v24 = vshll.u32 %v4078_v13, 16  ;;  %v457_v25 = vshll.u32 %v4083_v16, 16  ;;  %v461_v28 = vshrl.u32 %v4083_v16, 16  ;;  %v4097_v31 = vld [vmem:[%s4056_s11 + $0x10] sm:$0xf] }
  0x1f   : > { %v262_v26 = vor.u32 %v261_v19, %v258_v18  ;;  %v272_v27 = vor.u32 %v271_v21, %v267_v20  ;;  %v467_v29 = vshll.u32 %v4086_v17, 16  ;;  %v450_v33 = vrot.slane %v448_v23, 4  ;;  %v4108_v42 = vld [vmem:[%s4056_s11 + $0x14] sm:$0x1]  ;;  %v4119_v54 = vld [vmem:[%s4056_s11 + $0x6c] sm:$0xf] }
  0x20   : > { %v453_v34 = vrot.slane %v451_v24, 5  ;;  %v459_v35 = vrot.slane %v457_v25, 5  ;;  %v463_v39 = vrot.slane %v461_v28, 4  ;;  %v280_v43 = vshrl.u32 %v4094_v30, 16  ;;  %5673 = vst [vmem:[#allocation6_spill] sm:$0xff] %v4119_v54  ;;  %s5580_s19 = scalar_lea.sflag [#allocation3], %s188_s7 }
  0x21   : > { %v263_v37 = vrot.slane %v262_v26, 4  ;;  %v273_v38 = vrot.slane %v272_v27, 4  ;;  %v469_v40 = vrot.slane %v467_v29, 5  ;;  %v283_v44 = vshll.u32 %v4094_v30, 16  ;;  %v4123_v59 = vld [vmem:[%s4056_s11 + $0x70] sm:$0xf] }
  0x22   : > { %v454_v41 = vor.u32 %v453_v34, %v450_v33  ;;  %v289_v45 = vshll.u32 %v4097_v31, 16  ;;  %v464_v48 = vor.u32 %v463_v39, %v459_v35  ;;  %v293_v49 = vshrl.u32 %v4097_v31, 16  ;;  %v4131_v0 = vld [vmem:[%s4056_s11 + $0x74] sm:$0x1]  ;;  %v4137_v10 = vld [vmem:[%s4056_s11 + $0x18] sm:$0xf] }
  0x23   : > { %v268_v46 = vsel %vm4101_vm4, %v263_v37, %v267_v20  ;;  %v278_v47 = vsel %vm4101_vm4, %v273_v38, %v277_v22  ;;  %v282_v52 = vrot.slane %v280_v43, 4  ;;  %v285_v53 = vrot.slane %v283_v44, 5  ;;  %5674 = vst [vmem:[#allocation7_spill] sm:$0xff] %v4131_v0  ;;  %v4146_v23 = vld [vmem:[%s4056_s11 + $0x1c] sm:$0xf]  ;;  %s3899_s28 = scalar_lea.vmem %s5574_s20, 4096 }
  0x24   : > { %v3137_v50 = vcombine.low %v268_v46, %v278_v47  ;;  %v455_v51 = vrot.slane %v454_v41, 4  ;;  %v465_v55 = vrot.slane %v464_v48, 4  ;;  %v291_v56 = vrot.slane %v289_v45, 5  ;;  %v4153_v27 = vld [vmem:[%s4056_s11 + $0x20] sm:$0x1]  ;;  %p3900_p11 = scmp.ne.s32.totalorder %s5574_s20, %s3899_s28  ;;  %s3961_s29 = smov [#allocation2]  }
  0x25   : > { %v295_v57 = vrot.slane %v293_v49, 4  ;;  %v299_v58 = vshll.u32 %v4108_v42, 16  ;;  %v286_v61 = vor.u32 %v285_v53, %v282_v52  ;;  %v472_v9 = vshrl.u32 %v4119_v54, 16  ;;  %v4160_v37 = vld [vmem:[%s4056_s11 + $0x78] sm:$0xf]  ;;  %s3903_s30 = sshll.u32 %s3961_s29, 4  ;;  %s3904_s30 = int_to_ptr.vmem [resolvable:$false] %s3903_s30 }
  0x26   : > { %3523 = vmatprep.mubr.msk.bf16.mxu0 %vm689_vm3, %v3137_v50  ;;  %v460_v60 = vsel %vm4101_vm4, %v455_v51, %v459_v35  ;;  %v470_v1 = vsel %vm4101_vm4, %v465_v55, %v469_v40  ;;  %v475_v14 = vshll.u32 %v4119_v54, 16  ;;  %v481_v18 = vshll.u32 %v4123_v59, 16  ;;  %5676 = vst [vmem:[#allocation9_spill] sm:$0xff] %v4160_v37  ;;  %v4168_v43 = vld [vmem:[%s5621_s1 + $0x8] sm:$0x3]  ;;  %p3901_p12 = pnand %p3900_p11, %p4027_p5  ;;  %s3905_s5 = scalar_lea.vmem %s3904_s30, 8192 }
  0x27   : > { %v296_v2 = vor.u32 %v295_v57, %v291_v56  ;;  %v301_v3 = vrot.slane %v299_v58, 5  ;;  %v4139_v11 = vcombine.low %v460_v60, %v470_v1  ;;  %v287_v12 = vrot.slane %v286_v61, 4  ;;  %v4173_v48 = vld [vmem:[%s4056_s11 + $0x7c] sm:$0xf]  ;;  %v4181_v58 = vld [vmem:[%s4056_s11 + $0x80] sm:$0x1]  ;;  %p3906_p0 = scmp.lt.s32.totalorder %s5574_s20, %s3904_s30  ;;  %p3907_p1 = scmp.lt.s32.totalorder %s3905_s5, %s3899_s28 }
  0x28   : > { %v474_v20 = vrot.slane %v472_v9, 4  ;;  %v485_v21 = vshrl.u32 %v4123_v59, 16  ;;  %v491_v22 = vshll.u32 %v4131_v0, 16  ;;  %v477_v25 = vrot.slane %v475_v14, 5  ;;  %5678 = vst [vmem:[#allocation11_spill] sm:$0xff] %v4173_v48  ;;  %5679 = vst [vmem:[#allocation12_spill] sm:$0xff] %v4181_v58  ;;  %p3902_p13 = pneg %p3901_p12 }
  0x29   : > { %5675 = vst [vmem:[#allocation8_spill] sm:$0xff] %v4139_v11  ;;  %v297_v19 = vrot.slane %v296_v2, 4  ;;  %3539 = vmatprep.mubr.msk.bf16.mxu1 %vm689_vm3, %v4139_v11  ;;  %v292_v24 = vsel %vm4101_vm4, %v287_v12, %v291_v56  ;;  %v483_v26 = vrot.slane %v481_v18, 5  ;;  %v304_v28 = vshrl.u32 %v4137_v10, 16  ;;  %v4195_v18 = vld [vmem:[%s4056_s11 + $0x28] sm:$0xf]  ;;  %p3908_p2 = por %p3907_p1, %p3906_p0 }
  0x2a   : > { %v487_v33 = vrot.slane %v485_v21, 4  ;;  %v493_v34 = vrot.slane %v491_v22, 5  ;;  %v307_v35 = vshll.u32 %v4137_v10, 16  ;;  %v478_v39 = vor.u32 %v477_v25, %v474_v20 }
  0x2b   : > { %v302_v29 = vsel %vm4101_vm4, %v297_v19, %v301_v3  ;;  %v306_v40 = vrot.slane %v304_v28, 4  ;;  %v313_v41 = vshll.u32 %v4146_v23, 16  ;;  %v317_v46 = vshrl.u32 %v4146_v23, 16  ;;  %v4187_v3 = vld [vmem:[%s4056_s11 + $0x24] sm:$0xf]  ;;  %p3909_p3 = pnand %p3908_p2, %p3902_p13 }
  0x2c   : > { %v4162_v38 = vcombine.low %v292_v24, %v302_v29  ;;  %v488_v44 = vor.u32 %v487_v33, %v483_v26  ;;  %v309_v45 = vrot.slane %v307_v35, 5  ;;  %v323_v47 = vshll.u32 %v4153_v27, 16  ;;  %v4203_v24 = vld [vmem:[%s5621_s1 + $0x6] sm:$0x3]  ;;  %v4208_v29 = vld [vmem:[%s4056_s11 + $0x2c] sm:$0x1] }
  0x2d   : > { %v479_v49 = vrot.slane %v478_v39, 4  ;;  %v315_v50 = vrot.slane %v313_v41, 5  ;;  %v496_v51 = vshrl.u32 %v4160_v37, 16  ;;  %v499_v52 = vshll.u32 %v4160_v37, 16  ;;  %v4216_v41 = vld [vmem:[%s4056_s11 + $0x84] sm:$0xf] }
  0x2e   : > { %5677 = vst [vmem:[#allocation10_spill] sm:$0xff] %v4162_v38  ;;  %3524 = vmatmul.mubr.msk.bf16.vlgmr.msra.gmra.mxu0 %vm689_vm3, %v4162_v38  ;;  %v489_v53 = vrot.slane %v488_v44, 4  ;;  %v310_v55 = vor.u32 %v309_v45, %v306_v40  ;;  %v319_v56 = vrot.slane %v317_v46, 4  ;;  %v325_v57 = vrot.slane %v323_v47, 5  ;;  %v4363_v38 = vld [vmem:[%s4056_s11 + $0xb0] sm:$0x1] }
  0x2f   : > { %3590 = vmatpush3.bf16.msra.mxu0 %v4062_v5  ;;  %v484_v60 = vsel %vm4101_vm4, %v479_v49, %v483_v26  ;;  %v498_v61 = vrot.slane %v496_v51, 4  ;;  %v501_v1 = vrot.slane %v499_v52, 5  ;;  %v505_v2 = vshll.u32 %v4173_v48, 16  ;;  %v4223_v49 = vld [vmem:[%s4056_s11 + $0x88] sm:$0xf]  ;;  %5691 = vst [vmem:[#allocation24_spill] sm:$0xff] %v4363_v38 }
  0x30   : > { %3834 = vmatprep.subr.msk.bf16.mxu0 %vm738_vm0, %v4168_v43  ;;  %v494_v5 = vsel %vm4101_vm4, %v489_v53, %v493_v34  ;;  %v311_v9 = vrot.slane %v310_v55, 4  ;;  %v320_v12 = vor.u32 %v319_v56, %v315_v50  ;;  %v509_v14 = vshrl.u32 %v4173_v48, 16  ;;  %v4385_v48 = vld [vmem:[%s4056_s11 + $0x5c] sm:$0x1] }
  0x31   : > { %v4197_v19 = vcombine.low %v484_v60, %v494_v5  ;;  %v502_v20 = vor.u32 %v501_v1, %v498_v61  ;;  %v507_v21 = vrot.slane %v505_v2, 5  ;;  %v515_v22 = vshll.u32 %v4181_v58, 16 }
  0x32   : > { %v316_v25 = vsel %vm4101_vm4, %v311_v9, %v315_v50  ;;  %v321_v26 = vrot.slane %v320_v12, 4  ;;  %v511_v28 = vrot.slane %v509_v14, 4  ;;  %v328_v33 = vshrl.u32 %v4187_v3, 16  ;;  %v4242_v9 = vld [vmem:[%s4056_s11 + $0x30] sm:$0xf] }
  0x33   : > { %5680 = vst [vmem:[#allocation13_spill] sm:$0xff] %v4197_v19  ;;  %3540 = vmatmul.mubr.msk.bf16.vlgmr.msra.gmra.mxu1 %vm689_vm3, %v4197_v19  ;;  %v503_v34 = vrot.slane %v502_v20, 4  ;;  %v517_v35 = vrot.slane %v515_v22, 5  ;;  %v331_v39 = vshll.u32 %v4187_v3, 16  ;;  %v337_v40 = vshll.u32 %v4195_v18, 16 }
  0x34   : > { %3556 = vmatpush3.bf16.msra.mxu1 %v4059_v4  ;;  %v326_v44 = vsel %vm4101_vm4, %v321_v26, %v325_v57  ;;  %v512_v45 = vor.u32 %v511_v28, %v507_v21  ;;  %v330_v46 = vrot.slane %v328_v33, 4  ;;  %v341_v47 = vshrl.u32 %v4195_v18, 16  ;;  %v4233_v57 = vld [vmem:[%s4056_s11 + $0x8c] sm:$0x1]  ;;  %v4247_v22 = vld [vmem:[%s4056_s11 + $0x34] sm:$0xf] }
  0x35   : > { %v4225_v50 = vcombine.low %v316_v25, %v326_v44  ;;  %v508_v51 = vsel %vm4101_vm4, %v503_v34, %v507_v21  ;;  %v333_v52 = vrot.slane %v331_v39, 5  ;;  %v339_v53 = vrot.slane %v337_v40, 5  ;;  %3833 = vmatprep.subr.msk.bf16.mxu1 %vm738_vm0, %v4203_v24 }
  0x36   : > { %v513_v4 = vrot.slane %v512_v45, 4  ;;  %v343_v55 = vrot.slane %v341_v47, 4  ;;  %v347_v56 = vshll.u32 %v4208_v29, 16  ;;  %v520_v60 = vshrl.u32 %v4216_v41, 16 }
  0x37   : > { %5681 = vst [vmem:[#allocation14_spill] sm:$0xff] %v4225_v50  ;;  %3527 = vmatprep.mubr.msk.bf16.mxu0 %vm689_vm3, %v4225_v50  ;;  %v334_v61 = vor.u32 %v333_v52, %v330_v46  ;;  %v523_v1 = vshll.u32 %v4216_v41, 16  ;;  %v529_v2 = vshll.u32 %v4223_v49, 16  ;;  %v533_v5 = vshrl.u32 %v4223_v49, 16  ;;  %v4258_v46 = vld [vmem:[%s4056_s11 + $0x38] sm:$0x1] }
  0x38   : > { %v518_v12 = vsel %vm4101_vm4, %v513_v4, %v517_v35  ;;  %v344_v14 = vor.u32 %v343_v55, %v339_v53  ;;  %v349_v20 = vrot.slane %v347_v56, 5  ;;  %v522_v21 = vrot.slane %v520_v60, 4  ;;  %v4263_v52 = vld [vmem:[%s4056_s11 + $0x90] sm:$0xf] }
  0x39   : > { %v4249_v25 = vcombine.low %v508_v51, %v518_v12  ;;  %v335_v26 = vrot.slane %v334_v61, 4  ;;  %v525_v28 = vrot.slane %v523_v1, 5  ;;  %v531_v33 = vrot.slane %v529_v2, 5  ;;  %v4268_v61 = vld [vmem:[%s4056_s11 + $0x94] sm:$0xf] }
  0x3a   : > { %v345_v34 = vrot.slane %v344_v14, 4  ;;  %v535_v39 = vrot.slane %v533_v5, 4  ;;  %v539_v40 = vshll.u32 %v4233_v57, 16  ;;  %v352_v44 = vshrl.u32 %v4242_v9, 16 }
  0x3b   : > { %5682 = vst [vmem:[#allocation15_spill] sm:$0xff] %v4249_v25  ;;  %3543 = vmatprep.mubr.msk.bf16.mxu1 %vm689_vm3, %v4249_v25  ;;  %v340_v35 = vsel %vm4101_vm4, %v335_v26, %v339_v53  ;;  %v526_v45 = vor.u32 %v525_v28, %v522_v21  ;;  %v355_v47 = vshll.u32 %v4242_v9, 16  ;;  %v361_v51 = vshll.u32 %v4247_v22, 16  ;;  %v4314_v25 = vld [vmem:[%s4056_s11 + $0xa0] sm:$0xf] }
  0x3c   : > { %v350_v4 = vsel %vm4101_vm4, %v345_v34, %v349_v20  ;;  %v536_v55 = vor.u32 %v535_v39, %v531_v33  ;;  %v541_v56 = vrot.slane %v539_v40, 5  ;;  %v354_v60 = vrot.slane %v352_v44, 4  ;;  %v4280_v34 = vld [vmem:[%s4056_s11 + $0x98] sm:$0x1]  ;;  %v4285_v44 = vld [vmem:[%s4056_s11 + $0x3c] sm:$0xf] }
  0x3d   : > { %v4270_v53 = vcombine.low %v340_v35, %v350_v4  ;;  %v527_v1 = vrot.slane %v526_v45, 4  ;;  %v357_v2 = vrot.slane %v355_v47, 5  ;;  %v363_v5 = vrot.slane %v361_v51, 5  ;;  %v4290_v4 = vld [vmem:[%s4056_s11 + $0x40] sm:$0xf] }
  0x3e   : > { %v537_v12 = vrot.slane %v536_v55, 4  ;;  %v365_v14 = vshrl.u32 %v4247_v22, 16  ;;  %v371_v21 = vshll.u32 %v4258_v46, 16  ;;  %v544_v20 = vshrl.u32 %v4263_v52, 16 }
  0x3f   : > { %5683 = vst [vmem:[#allocation16_spill] sm:$0xff] %v4270_v53  ;;  %3528 = vmatmul.mubr.msk.bf16.gmra.mxu0 %vm689_vm3, %v4270_v53  ;;  %v532_v26 = vsel %vm4101_vm4, %v527_v1, %v531_v33  ;;  %v358_v28 = vor.u32 %v357_v2, %v354_v60  ;;  %v547_v39 = vshll.u32 %v4263_v52, 16  ;;  %v553_v40 = vshll.u32 %v4268_v61, 16 }
  0x40   : > { %v542_v35 = vsel %vm4101_vm4, %v537_v12, %v541_v56  ;;  %v367_v45 = vrot.slane %v365_v14, 4  ;;  %v373_v47 = vrot.slane %v371_v21, 5  ;;  %v546_v51 = vrot.slane %v544_v20, 4  ;;  %v4302_v14 = vld [vmem:[%s4056_s11 + $0x44] sm:$0x1] }
  0x41   : > { %v4292_v33 = vcombine.low %v532_v26, %v542_v35  ;;  %v359_v55 = vrot.slane %v358_v28, 4  ;;  %v549_v60 = vrot.slane %v547_v39, 5  ;;  %v555_v1 = vrot.slane %v553_v40, 5  ;;  %v4307_v26 = vld [vmem:[%s4056_s11 + $0x9c] sm:$0xf] }
  0x42   : > { %v368_v2 = vor.u32 %v367_v45, %v363_v5  ;;  %v557_v36 = vshrl.u32 %v4268_v61, 16  ;;  %v563_v63 = vshll.u32 %v4280_v34, 16  ;;  %v376_v15 = vshrl.u32 %v4285_v44, 16 }
  0x43   : > { %5684 = vst [vmem:[#allocation17_spill] sm:$0xff] %v4292_v33  ;;  %3544 = vmatmul.mubr.msk.bf16.gmra.mxu1 %vm689_vm3, %v4292_v33  ;;  %v364_v56 = vsel %vm4101_vm4, %v359_v55, %v363_v5  ;;  %v550_v12 = vor.u32 %v549_v60, %v546_v51  ;;  %v379_v21 = vshll.u32 %v4285_v44, 16  ;;  %v385_v20 = vshll.u32 %v4290_v4, 16 }
  0x44   : > { %v369_v28 = vrot.slane %v368_v2, 4  ;;  %v559_v39 = vrot.slane %v557_v36, 4  ;;  %v565_v40 = vrot.slane %v563_v63, 5  ;;  %v378_v35 = vrot.slane %v376_v15, 4 }
  0x45   : > { %v551_v45 = vrot.slane %v550_v12, 4  ;;  %v381_v62 = vrot.slane %v379_v21, 5  ;;  %v387_v33 = vrot.slane %v385_v20, 5  ;;  %v389_v5 = vshrl.u32 %v4290_v4, 16  ;;  %v4322_v21 = vld [vmem:[%s4056_s11 + $0xa4] sm:$0x1] }
  0x46   : > { %v374_v51 = vsel %vm4101_vm4, %v369_v28, %v373_v47  ;;  %v560_v55 = vor.u32 %v559_v39, %v555_v1  ;;  %v395_v60 = vshll.u32 %v4302_v14, 16  ;;  %v568_v2 = vshrl.u32 %v4307_v26, 16  ;;  %5686 = vst [vmem:[#allocation19_spill] sm:$0xff] %v4322_v21  ;;  %v4325_v20 = vld [vmem:[%s4056_s11 + $0x48] sm:$0xf] }
  0x47   : > { %v4317_v36 = vcombine.low %v364_v56, %v374_v51  ;;  %v556_v15 = vsel %vm4101_vm4, %v551_v45, %v555_v1  ;;  %v382_v63 = vor.u32 %v381_v62, %v378_v35  ;;  %v391_v12 = vrot.slane %v389_v5, 4 }
  0x48   : > { %v561_v47 = vrot.slane %v560_v55, 4  ;;  %v397_v28 = vrot.slane %v395_v60, 5  ;;  %v570_v39 = vrot.slane %v568_v2, 4  ;;  %v571_v19 = vshll.u32 %v4307_v26, 16  ;;  %v4336_v55 = vld [vmem:[%s4056_s11 + $0x4c] sm:$0xf] }
  0x49   : > { %5685 = vst [vmem:[#allocation18_spill] sm:$0xff] %v4317_v36  ;;  %3531 = vmatprep.mubr.msk.bf16.mxu0 %vm689_vm3, %v4317_v36  ;;  %v383_v56 = vrot.slane %v382_v63, 4  ;;  %v392_v51 = vor.u32 %v391_v12, %v387_v33  ;;  %v577_v1 = vshll.u32 %v4314_v25, 16  ;;  %v581_v62 = vshrl.u32 %v4314_v25, 16  ;;  %v4344_v36 = vld [vmem:[%s4056_s11 + $0x50] sm:$0x1] }
  0x4a   : > { %v566_v35 = vsel %vm4101_vm4, %v561_v47, %v565_v40  ;;  %v573_v45 = vrot.slane %v571_v19, 5  ;;  %v587_v5 = vshll.u32 %v4322_v21, 16  ;;  %v400_v60 = vshrl.u32 %v4325_v20, 16  ;;  %v4347_v47 = vld [vmem:[%s4056_s11 + $0xa8] sm:$0xf] }
  0x4b   : > { %v4339_v2 = vcombine.low %v556_v15, %v566_v35  ;;  %v388_v63 = vsel %vm4101_vm4, %v383_v56, %v387_v33  ;;  %v393_v12 = vrot.slane %v392_v51, 4  ;;  %v579_v11 = vrot.slane %v577_v1, 5  ;;  %5688 = vst [vmem:[#allocation21_spill] sm:$0xff] %v4347_v47 }
  0x4c   : > { %v574_v53 = vor.u32 %v573_v45, %v570_v39  ;;  %v583_v50 = vrot.slane %v581_v62, 4  ;;  %v589_v40 = vrot.slane %v587_v5, 5  ;;  %v402_v19 = vrot.slane %v400_v60, 4  ;;  %v4360_v45 = vld [vmem:[%s4056_s11 + $0xac] sm:$0xf] }
  0x4d   : > { %5687 = vst [vmem:[#allocation20_spill] sm:$0xff] %v4339_v2  ;;  %3547 = vmatprep.mubr.msk.bf16.mxu1 %vm689_vm3, %v4339_v2  ;;  %v398_v15 = vsel %vm4101_vm4, %v393_v12, %v397_v28  ;;  %v403_v33 = vshll.u32 %v4325_v20, 16  ;;  %v409_v56 = vshll.u32 %v4336_v55, 16  ;;  %v413_v51 = vshrl.u32 %v4336_v55, 16  ;;  %5690 = vst [vmem:[#allocation23_spill] sm:$0xff] %v4360_v45 }
  0x4e   : > { %v4356_v1 = vcombine.low %v388_v63, %v398_v15  ;;  %v575_v39 = vrot.slane %v574_v53, 4  ;;  %v584_v62 = vor.u32 %v583_v50, %v579_v11  ;;  %v419_v35 = vshll.u32 %v4344_v36, 16 }
  0x4f   : > { %v405_v5 = vrot.slane %v403_v33, 5  ;;  %v411_v60 = vrot.slane %v409_v56, 5  ;;  %v415_v2 = vrot.slane %v413_v51, 4  ;;  %v592_v28 = vshrl.u32 %v4347_v47, 16  ;;  %v4373_v51 = vld [vmem:[%s4056_s11 + $0x54] sm:$0xf] }
  0x50   : > { %5689 = vst [vmem:[#allocation22_spill] sm:$0xff] %v4356_v1  ;;  %3532 = vmatmul.mubr.msk.bf16.gmra.mxu0 %vm689_vm3, %v4356_v1  ;;  %v580_v53 = vsel %vm4101_vm4, %v575_v39, %v579_v11  ;;  %v585_v50 = vrot.slane %v584_v62, 4  ;;  %v421_v63 = vrot.slane %v419_v35, 5  ;;  %v595_v12 = vshll.u32 %v4347_v47, 16  ;;  %v4380_v62 = vld [vmem:[%s4056_s11 + $0x58] sm:$0xf] }
  0x51   : > { %v406_v15 = vor.u32 %v405_v5, %v402_v19  ;;  %v416_v58 = vor.u32 %v415_v2, %v411_v60  ;;  %v594_v33 = vrot.slane %v592_v28, 4  ;;  %v601_v56 = vshll.u32 %v4360_v45, 16 }
  0x52   : > { %v590_v1 = vsel %vm4101_vm4, %v585_v50, %v589_v40  ;;  %v597_v37 = vrot.slane %v595_v12, 5  ;;  %v605_v11 = vshrl.u32 %v4360_v45, 16  ;;  %v611_v39 = vshll.u32 %v4363_v38, 16 }
  0x53   : > { %v4382_v2 = vcombine.low %v580_v53, %v590_v1  ;;  %v407_v19 = vrot.slane %v406_v15, 4  ;;  %v417_v35 = vrot.slane %v416_v58, 4  ;;  %v603_v5 = vrot.slane %v601_v56, 5 }
  0x54   : > { %v598_v28 = vor.u32 %v597_v37, %v594_v33  ;;  %v607_v0 = vrot.slane %v605_v11, 4  ;;  %v613_v54 = vrot.slane %v611_v39, 5  ;;  %v424_v40 = vshrl.u32 %v4373_v51, 16  ;;  %v4397_v37 = vld [vmem:[%s4056_s11 + $0xb4] sm:$0xf] }
  0x55   : > { %5692 = vst [vmem:[#allocation25_spill] sm:$0xff] %v4382_v2  ;;  %3548 = vmatmul.mubr.msk.bf16.gmra.mxu1 %vm689_vm3, %v4382_v2  ;;  %v412_v50 = vsel %vm4101_vm4, %v407_v19, %v411_v60  ;;  %v422_v1 = vsel %vm4101_vm4, %v417_v35, %v421_v63  ;;  %v427_v58 = vshll.u32 %v4373_v51, 16  ;;  %v433_v53 = vshll.u32 %v4380_v62, 16  ;;  %5693 = vst [vmem:[#allocation26_spill] sm:$0xff] %v4397_v37  ;;  %v4402_v11 = vld [vmem:[%s4056_s11 + $0xb8] sm:$0xf] }
  0x56   : > { %v4399_v12 = vcombine.low %v412_v50, %v422_v1  ;;  %v599_v15 = vrot.slane %v598_v28, 4  ;;  %v608_v33 = vor.u32 %v607_v0, %v603_v5  ;;  %v426_v56 = vrot.slane %v424_v40, 4 }
  0x57   : > { %v429_v39 = vrot.slane %v427_v58, 5  ;;  %v435_v2 = vrot.slane %v433_v53, 5  ;;  %v437_v60 = vshrl.u32 %v4380_v62, 16  ;;  %v443_v63 = vshll.u32 %v4385_v48, 16  ;;  %v4413_v58 = vld [vmem:[%s4056_s11 + $0xbc] sm:$0x1] }
  0x58   : > { %5694 = vst [vmem:[#allocation27_spill] sm:$0xff] %v4399_v12  ;;  %3535 = vmatprep.mubr.msk.bf16.mxu0 %vm689_vm3, %v4399_v12  ;;  %v604_v19 = vsel %vm4101_vm4, %v599_v15, %v603_v5  ;;  %v609_v35 = vrot.slane %v608_v33, 4  ;;  %v616_v28 = vshrl.u32 %v4397_v37, 16  ;;  %v619_v0 = vshll.u32 %v4397_v37, 16 }
  0x59   : > { %v430_v40 = vor.u32 %v429_v39, %v426_v56  ;;  %v439_v50 = vrot.slane %v437_v60, 4  ;;  %v445_v1 = vrot.slane %v443_v63, 5  ;;  %v625_v53 = vshll.u32 %v4402_v11, 16 }
  0x5a   : > { %v614_v38 = vsel %vm4101_vm4, %v609_v35, %v613_v54  ;;  %v618_v47 = vrot.slane %v616_v28, 4  ;;  %v621_v12 = vrot.slane %v619_v0, 5  ;;  %v629_v45 = vshrl.u32 %v4402_v11, 16 }
  0x5b   : > { %v4419_v5 = vcombine.low %v604_v19, %v614_v38  ;;  %v431_v15 = vrot.slane %v430_v40, 4  ;;  %v440_v33 = vor.u32 %v439_v50, %v435_v2  ;;  %v627_v21 = vrot.slane %v625_v53, 5 }
  0x5c   : > { %v622_v37 = vor.u32 %v621_v12, %v618_v47  ;;  %v631_v56 = vrot.slane %v629_v45, 4  ;;  %v635_v39 = vshll.u32 %v4413_v58, 16  ;;  %v3201_v54 = vrot.slane %v4065_v6, 9 }
  0x5d   : > { %3551 = vmatprep.mubr.msk.bf16.mxu1 %vm689_vm3, %v4419_v5  ;;  %v436_v38 = vsel %vm4101_vm4, %v431_v15, %v435_v2  ;;  %v441_v63 = vrot.slane %v440_v33, 4  ;;  %v1216_v47 = vrot.slane %v4068_v7, 5  ;;  %v4436_v45 = vcombine.low %v4094_v30, %v4097_v31 }
  0x5e   : > { %v623_v12 = vrot.slane %v622_v37, 4  ;;  %v632_v19 = vor.u32 %v631_v56, %v627_v21  ;;  %v637_v35 = vrot.slane %v635_v39, 5  ;;  %v3202_v28 = vrot.slane %v4094_v30, 9 }
  0x5f   : > { %v446_v0 = vsel %vm4101_vm4, %v441_v63, %v445_v1  ;;  %v1217_v40 = vsel %vm4424_vm7, %v3201_v54, %v1216_v47  ;;  %v1218_v50 = vrot.slane %v1216_v47, 4  ;;  %v5697_v2 = vrot.slane %v4097_v31, 5 }
  0x60   : > { %v4445_v15 = vcombine.low %v436_v38, %v446_v0  ;;  %v628_v33 = vsel %vm4101_vm4, %v623_v12, %v627_v21  ;;  %v633_v37 = vrot.slane %v632_v19, 4  ;;  %v5699_v1 = vrot.slane %v4071_v8, 5 }
  0x61   : > { %v1225_v53 = vrot.slane %v5697_v2, 4  ;;  %v5698_v56 = vmov %v5697_v2  ;;  %v5700_v54 = vrot.slane %v4108_v42, 5  ;;  %v4463_v63 = vcombine.low %v4137_v10, %v4146_v23 }
  0x62   : > { %v1224_v30 = vsel %vm4424_vm7, %v3202_v28, %v5698_v56  ;;  %v1220_v39 = vsel %vm4424_vm7, %v1218_v50, %v5699_v1  ;;  %v3203_v21 = vrot.slane %v4137_v10, 9  ;;  %3536 = vmatmul.mubr.msk.bf16.gmra.mxu0 %vm689_vm3, %v4445_v15  ;;  %v638_v8 = vsel %vm4101_vm4, %v633_v37, %v637_v35 }
  0x63   : > { %v1227_v38 = vsel %vm4424_vm7, %v1225_v53, %v5700_v54  ;;  %v3218_v31 = vcombine.low %v1217_v40, %v1220_v39  ;;  %v1230_v42 = vrot.slane %v4146_v23, 5  ;;  %v4473_v12 = vcombine.low %v628_v33, %v638_v8 }
  0x64   : > { %v4470_v47 = vcombine.low %v1224_v30, %v1227_v38  ;;  %v1233_v19 = vrot.slane %v4153_v27, 5  ;;  %v1237_v0 = vrot.slane %v4195_v18, 5  ;;  %v3204_v35 = vrot.slane %v4187_v3, 9 }
  0x65   : > { %5701 = vst [vmem:[#allocation28_spill] sm:$0xff] %v4473_v12  ;;  %3591 = vmatprep.mubr.msk.bf16.mxu0 %vm689_vm3, %v3218_v31  ;;  %v1231_v10 = vsel %vm4424_vm7, %v3203_v21, %v1230_v42  ;;  %v1232_v28 = vrot.slane %v1230_v42, 4  ;;  %3552 = vmatmul.mubr.msk.bf16.gmra.mxu1 %vm689_vm3, %v4473_v12  ;;  %v3205_v40 = vrot.slane %v4242_v9, 9  ;;  %v1244_v23 = vrot.slane %v4247_v22, 5 }
  0x66   : > { %v5702_v27 = vcombine.low %v4065_v6, %v4068_v7  ;;  %v1239_v2 = vrot.slane %v1237_v0, 4  ;;  %v1240_v53 = vrot.slane %v4208_v29, 5  ;;  %v1247_v33 = vrot.slane %v4258_v46, 5  ;;  %v4508_v46 = vld [vmem:[%s5621_s1 + $0xc] sm:$0x3] }
  0x67   : > { %v1234_v50 = vsel %vm4424_vm7, %v1232_v28, %v1233_v19  ;;  %v1246_v56 = vrot.slane %v1244_v23, 4  ;;  %v1859_v30 = vsel %vm738_vm0, %v4168_v43, 0  ;;  %v1251_v1 = vrot.slane %v4290_v4, 5  ;;  %v4525_v19 = vld [vmem:[%s5621_s1 + $0xa] sm:$0x3] }
  0x68   : > { %3557 = vmatprep.mubr.msk.bf16.mxu1 %vm689_vm3, %v5702_v27  ;;  %v4493_v37 = vcombine.low %v1231_v10, %v1234_v50  ;;  %v1631_v6 = vsel %vm738_vm0, %v4203_v24, 0  ;;  %v1238_v7 = vsel %vm4424_vm7, %v3204_v35, %v1237_v0  ;;  %v1245_v39 = vsel %vm4424_vm7, %v3205_v40, %v1244_v23 }
  0x69   : > { %v1258_v29 = vrot.slane %v4336_v55, 5  ;;  %v1241_v43 = vsel %vm4424_vm7, %v1239_v2, %v1240_v53  ;;  %v1248_v24 = vsel %vm4424_vm7, %v1246_v56, %v1247_v33  ;;  %v3206_v54 = vrot.slane %v4285_v44, 9 }
  0x6a   : > { %3592 = vmatmul.mubr.msk.bf16.vlgmr.msra.gmra.mxu0 %vm689_vm3, %v4470_v47  ;;  %v1254_v38 = vrot.slane %v4302_v14, 5  ;;  %v1253_v21 = vrot.slane %v1251_v1, 4  ;;  %v3207_v8 = vrot.slane %v4325_v20, 9  ;;  %v1261_v42 = vrot.slane %v4344_v36, 5 }
  0x6b   : > { %3658 = vmatpush3.bf16.msra.mxu0 %v1859_v30  ;;  %3595 = vmatprep.mubr.msk.bf16.mxu0 %vm689_vm3, %v4493_v37  ;;  %v1260_v31 = vrot.slane %v1258_v29, 4  ;;  %v4533_v14 = vcombine.low %v1238_v7, %v1241_v43  ;;  %v4535_v10 = vcombine.low %v1245_v39, %v1248_v24  ;;  %v1252_v36 = vsel %vm4424_vm7, %v3206_v54, %v1251_v1 }
  0x6c   : > { %3836 = vmatprep.subr.msk.bf16.mxu0 %vm738_vm0, %v4508_v46  ;;  %v1255_v28 = vsel %vm4424_vm7, %v1253_v21, %v1254_v38  ;;  %v1259_v0 = vsel %vm4424_vm7, %v3207_v8, %v1258_v29  ;;  %v1265_v40 = vrot.slane %v4380_v62, 5  ;;  %v1275_v23 = vrot.slane %v4086_v17, 5  ;;  %v5703_v8 = vld [vmem:[#allocation19_spill] sm:$0xff] }
  0x6d   : > { %3558 = vmatmul.mubr.msk.bf16.vlgmr.msra.gmra.mxu1 %vm689_vm3, %v4436_v45  ;;  %v1262_v35 = vsel %vm4424_vm7, %v1260_v31, %v1261_v42  ;;  %v3208_v27 = vrot.slane %v4373_v51, 9  ;;  %v3209_v50 = vrot.slane %v4078_v13, 9  ;;  %v1272_v2 = vrot.slane %v4083_v16, 5  ;;  %v5704_v42 = vld [vmem:[#allocation23_spill] sm:$0xff] }
  0x6e   : > { %3624 = vmatpush3.bf16.msra.mxu1 %v1631_v6  ;;  %3561 = vmatprep.mubr.msk.bf16.mxu1 %vm689_vm3, %v4463_v63  ;;  %v4554_v53 = vcombine.low %v4187_v3, %v4195_v18  ;;  %v4558_v33 = vcombine.low %v4242_v9, %v4247_v22  ;;  %v4562_v56 = vcombine.low %v4285_v44, %v4290_v4  ;;  %v1268_v3 = vrot.slane %v4385_v48, 5 }
  0x6f   : > { %3835 = vmatprep.subr.msk.bf16.mxu1 %vm738_vm0, %v4525_v19  ;;  %v4566_v17 = vcombine.low %v4325_v20, %v4336_v55  ;;  %v4570_v30 = vcombine.low %v1252_v36, %v1255_v28  ;;  %v4572_v1 = vcombine.low %v1259_v0, %v1262_v35  ;;  %v4577_v18 = vcombine.low %v4216_v41, %v4223_v49  ;;  %v5705_v36 = vld [vmem:[#allocation21_spill] sm:$0xff] }
  0x70   : > { %v1267_v9 = vrot.slane %v1265_v40, 4  ;;  %v3212_v22 = vrot.slane %v4216_v41, 9  ;;  %v1293_v44 = vrot.slane %v4223_v49, 5  ;;  %v1296_v4 = vrot.slane %v4233_v57, 5 }
  0x71   : > { %v1266_v20 = vsel %vm4424_vm7, %v3208_v27, %v1265_v40  ;;  %v1273_v48 = vsel %vm4424_vm7, %v3209_v50, %v1272_v2  ;;  %v1274_v55 = vrot.slane %v1272_v2, 4  ;;  %v4590_v6 = vcombine.low %v4263_v52, %v4268_v61  ;;  %v5706_v40 = vld [vmem:[#allocation24_spill] sm:$0xff] }
  0x72   : > { %3596 = vmatmul.mubr.msk.bf16.gmra.mxu0 %vm689_vm3, %v4533_v14  ;;  %v1294_v41 = vsel %vm4424_vm7, %v3212_v22, %v1293_v44  ;;  %v1295_v49 = vrot.slane %v1293_v44, 4  ;;  %v3213_v57 = vrot.slane %v4263_v52, 9  ;;  %v1300_v7 = vrot.slane %v4268_v61, 5 }
  0x73   : > { %3599 = vmatprep.mubr.msk.bf16.mxu0 %vm689_vm3, %v4535_v10  ;;  %v1279_v39 = vrot.slane %v4123_v59, 5  ;;  %v1303_v29 = vrot.slane %v4280_v34, 5  ;;  %v4604_v43 = vcombine.low %v4307_v26, %v4314_v25  ;;  %v3214_v24 = vrot.slane %v4307_v26, 9 }
  0x74   : > { %v1269_v54 = vsel %vm4424_vm7, %v1267_v9, %v1268_v3  ;;  %v1297_v52 = vsel %vm4424_vm7, %v1295_v49, %v1296_v4  ;;  %v1301_v61 = vsel %vm4424_vm7, %v3213_v57, %v1300_v7  ;;  %v1302_v38 = vrot.slane %v1300_v7, 4  ;;  %v5707_v3 = vld [vmem:[#allocation26_spill] sm:$0xff]  ;;  %v5708_v57 = vld [vmem:[#allocation11_spill] sm:$0xff] }
  0x75   : > { %3562 = vmatmul.mubr.msk.bf16.gmra.mxu1 %vm689_vm3, %v4554_v53  ;;  %v4613_v21 = vcombine.low %v1294_v41, %v1297_v52  ;;  %v1307_v34 = vrot.slane %v4314_v25, 5  ;;  %v1310_v31 = vrot.slane %v5703_v8, 5  ;;  %v4619_v28 = vcombine.low %v5705_v36, %v5704_v42 }
  0x76   : > { %3565 = vmatprep.mubr.msk.bf16.mxu1 %vm689_vm3, %v4558_v33  ;;  %v1304_v26 = vsel %vm4424_vm7, %v1302_v38, %v1303_v29  ;;  %v3215_v0 = vrot.slane %v5705_v36, 9  ;;  %v1314_v35 = vrot.slane %v5704_v42, 5  ;;  %v1317_v27 = vrot.slane %v5706_v40, 5  ;;  %v5710_v42 = vld [vmem:[#allocation7_spill] sm:$0xff] }
  0x77   : > { %v4628_v50 = vcombine.low %v1301_v61, %v1304_v26  ;;  %v1308_v25 = vsel %vm4424_vm7, %v3214_v24, %v1307_v34  ;;  %v1309_v2 = vrot.slane %v1307_v34, 4  ;;  %v4634_v9 = vcombine.low %v5707_v3, %v4402_v11 }
  0x78   : > { %v1315_v22 = vsel %vm4424_vm7, %v3215_v0, %v1314_v35  ;;  %v1316_v44 = vrot.slane %v1314_v35, 4  ;;  %v3216_v4 = vrot.slane %v5707_v3, 9  ;;  %v1321_v41 = vrot.slane %v4402_v11, 5  ;;  %v5711_v0 = vld [vmem:[#allocation9_spill] sm:$0xff] }
  0x79   : > { %v1276_v49 = vsel %vm4424_vm7, %v1274_v55, %v1275_v23  ;;  %v1286_v7 = vrot.slane %v5708_v57, 5  ;;  %v1311_v29 = vsel %vm4424_vm7, %v1309_v2, %v1310_v31  ;;  %v1324_v24 = vrot.slane %v4413_v58, 5  ;;  %v5709_v55 = vld [vmem:[#allocation6_spill] sm:$0xff] }
  0x7a   : > { %3600 = vmatmul.mubr.msk.bf16.gmra.mxu0 %vm689_vm3, %v4570_v30  ;;  %v4650_v52 = vcombine.low %v1308_v25, %v1311_v29  ;;  %v1318_v61 = vsel %vm4424_vm7, %v1316_v44, %v1317_v27  ;;  %v1322_v11 = vsel %vm4424_vm7, %v3216_v4, %v1321_v41  ;;  %v1323_v38 = vrot.slane %v1321_v41, 4  ;;  %v5712_v27 = vld [vmem:[#allocation12_spill] sm:$0xff]  ;;  %v4737_v4 = vld [vmem:[%s4056_s11 + $0xc0] sm:$0xf]  ;;  %v247_v41 = vld [vmem:[%s4056_s11 + $0xc8] sm:$0x1] }
  0x7b   : > { %3603 = vmatprep.mubr.msk.bf16.mxu0 %vm689_vm3, %v4572_v1  ;;  %v4658_v23 = vcombine.low %v1266_v20, %v1269_v54  ;;  %v3210_v34 = vrot.slane %v5709_v55, 9  ;;  %v4661_v58 = vcombine.low %v1315_v22, %v1318_v61  ;;  %v4663_v8 = vcombine.low %v1273_v48, %v1276_v49  ;;  %v5713_v61 = vld [vmem:[#allocation10_spill] sm:$0xff] }
  0x7c   : > { %v1281_v31 = vrot.slane %v1279_v39, 4  ;;  %v1282_v36 = vrot.slane %v5710_v42, 5  ;;  %v1325_v26 = vsel %vm4424_vm7, %v1323_v38, %v1324_v24  ;;  %v3211_v35 = vrot.slane %v5711_v0, 9  ;;  %v5715_v42 = vld [vmem:[#allocation16_spill] sm:$0xff] }
  0x7d   : > { %3566 = vmatmul.mubr.msk.bf16.gmra.mxu1 %vm689_vm3, %v4562_v56  ;;  %v1288_v40 = vrot.slane %v1286_v7, 4  ;;  %v1289_v25 = vrot.slane %v5712_v27, 5  ;;  %v4670_v2 = vcombine.low %v1322_v11, %v1325_v26  ;;  %v4674_v20 = vcombine.low %v4373_v51, %v4380_v62  ;;  %v5719_v26 = vld [vmem:[#allocation8_spill] sm:$0xff] }
  0x7e   : > { %3569 = vmatprep.mubr.msk.bf16.mxu1 %vm689_vm3, %v4566_v17  ;;  %v4680_v48 = vcombine.low %v4078_v13, %v4083_v16  ;;  %v1280_v54 = vsel %vm4424_vm7, %v3210_v34, %v1279_v39  ;;  %v1283_v3 = vsel %vm4424_vm7, %v1281_v31, %v1282_v36  ;;  %v1287_v51 = vsel %vm4424_vm7, %v3211_v35, %v1286_v7  ;;  %v5714_v34 = vld [vmem:[#allocation14_spill] sm:$0xff]  ;;  %v5718_v36 = vld [vmem:[#allocation27_spill] sm:$0xff] }
  0x7f   : > { %v1290_v62 = vsel %vm4424_vm7, %v1288_v40, %v1289_v25  ;;  %v4696_v13 = vcombine.low %v1280_v54, %v1283_v3  ;;  %v4702_v39 = vcombine.low %v5709_v55, %v4123_v59  ;;  %v4708_v22 = vcombine.low %v5711_v0, %v5708_v57  ;;  %v4731_v59 = vld [vmem:[%s4056_s11 + $0xc4] sm:$0xf]  ;;  %v3342_v55 = vld [vmem:[%s5621_s1 + $0x10] sm:$0x3] }
  0x80   : > { %v4698_v16 = vcombine.low %v1287_v51, %v1290_v62  ;;  %v2057_v44 = vrot.slane %v4731_v59, 5  ;;  %v3286_v49 = vrot.slane %v4737_v4, 9  ;;  %v2060_v7 = vrot.slane %v247_v41, 5  ;;  %v5720_v0 = vld [vmem:[#allocation13_spill] sm:$0xff]  ;;  %v5721_v35 = vld [vmem:[#allocation15_spill] sm:$0xff] }
  0x81   : > { %v2277_v38 = vsel %vm738_vm0, %v4508_v46, 0  ;;  %v2071_v31 = vsel %vm738_vm0, %v4525_v19, 0  ;;  %v5716_v46 = vld [vmem:[#allocation18_spill] sm:$0xff]  ;;  %v5722_v40 = vld [vmem:[#allocation17_spill] sm:$0xff]  ;;  %v1827_v27 = vshrl.u32 %v4737_v4, 16  ;;  %v1830_v25 = vshll.u32 %v4737_v4, 16 }
  0x82   : > { %3604 = vmatmul.mubr.msk.bf16.gmra.mxu0 %vm689_vm3, %v4658_v23  ;;  %v2059_v57 = vrot.slane %v2057_v44, 4  ;;  %v2058_v29 = vsel %vm4424_vm7, %v3286_v49, %v2057_v44  ;;  %v5717_v19 = vld [vmem:[#allocation22_spill] sm:$0xff]  ;;  %v1840_v54 = vshrl.u32 %v4731_v59, 16  ;;  %v1836_v3 = vshll.u32 %v4731_v59, 16 }
  0x83   : > { %3607 = vmatprep.mubr.msk.bf16.mxu0 %vm689_vm3, %v4663_v8  ;;  %v1829_v51 = vrot.slane %v1827_v27, 4  ;;  %v1832_v62 = vrot.slane %v1830_v25, 5 }
  0x84   : > { %v2061_v24 = vsel %vm4424_vm7, %v2059_v57, %v2060_v7  ;;  %v1838_v44 = vrot.slane %v1836_v3, 5  ;;  %v1842_v49 = vrot.slane %v1840_v54, 4  ;;  %v5723_v57 = vld [vmem:[#allocation20_spill] sm:$0xff]  ;;  %v5724_v7 = vld [vmem:[#allocation25_spill] sm:$0xff]  ;;  %v3251_v3 = vcombine.low %v4737_v4, %v4731_v59 }
  0x85   : > { %3570 = vmatmul.mubr.msk.bf16.gmra.mxu1 %vm689_vm3, %v4674_v20  ;;  %v4749_v11 = vcombine.low %v2058_v29, %v2061_v24  ;;  %v1833_v29 = vor.u32 %v1832_v62, %v1829_v51  ;;  %v2717_v51 = vsel %vm738_vm0, %v3342_v55, 0 }
  0x86   : > { %3573 = vmatprep.mubr.msk.bf16.mxu1 %vm689_vm3, %v4680_v48  ;;  %v1843_v24 = vor.u32 %v1842_v49, %v1838_v44 }
  0x8a   : > { %3608 = vmatmul.mubr.msk.bf16.gmra.mxu0 %vm689_vm3, %v4696_v13 }
  0x8b   : > { %3611 = vmatprep.mubr.msk.bf16.mxu0 %vm689_vm3, %v4698_v16 }
  0x8d   : > { %3574 = vmatmul.mubr.msk.bf16.gmra.mxu1 %vm689_vm3, %v4702_v39 }
  0x8e   : > { %3577 = vmatprep.mubr.msk.bf16.mxu1 %vm689_vm3, %v4708_v22 }
  0x92   : > { %3612 = vmatmul.mubr.msk.bf16.gmra.mxu0 %vm689_vm3, %v4613_v21 }
  0x93   : > { %3615 = vmatprep.mubr.msk.bf16.mxu0 %vm689_vm3, %v4628_v50 }
  0x95   : > { %3578 = vmatmul.mubr.msk.bf16.gmra.mxu1 %vm689_vm3, %v4577_v18 }
  0x96   : > { %3581 = vmatprep.mubr.msk.bf16.mxu1 %vm689_vm3, %v4590_v6 }
  0x9a   : > { %3616 = vmatmul.mubr.msk.bf16.gmra.mxu0 %vm689_vm3, %v4650_v52 }
  0x9b   : > { %3619 = vmatprep.mubr.msk.bf16.mxu0 %vm689_vm3, %v4661_v58 }
  0x9d   : > { %3582 = vmatmul.mubr.msk.bf16.gmra.mxu1 %vm689_vm3, %v4604_v43 }
  0x9e   : > { %3585 = vmatprep.mubr.msk.bf16.mxu1 %vm689_vm3, %v4619_v28 }
  0xa2   : > { %3620 = vmatmul.mubr.msk.bf16.gmra.mxu0 %vm689_vm3, %v4670_v2 }
  0xa3   : > { %3659 = vmatprep.mubr.msk.bf16.mxu0 %vm689_vm3, %v5713_v61  ;;  %v1846_v61 = vshll.u32 %v247_v41, 16 }
  0xa5   : > { %3586 = vmatmul.mubr.msk.bf16.gmra.mxu1 %vm689_vm3, %v4634_v9  ;;  %v1848_v27 = vrot.slane %v1846_v61, 5  ;;  %v4941_v61 = vld [vmem:[%s4056_s11 + $0xd0] sm:$0xf] }
  0xa6   : > { %3625 = vmatprep.mubr.msk.bf16.mxu1 %vm689_vm3, %v4436_v45  ;;  %v3323_v45 = vld [vmem:[%s5621_s1 + $0xe] sm:$0x3] }
  0xa7   : > { %v2505_v62 = vsel %vm738_vm0, %v3323_v45, 0 }
  0xaa   : > { %3660 = vmatmul.mubr.msk.bf16.vlgmr.msra.gmra.mxu0 %vm689_vm3, %v5714_v34 }
  0xab   : > { %3726 = vmatpush3.bf16.msra.mxu0 %v2277_v38  ;;  %3663 = vmatprep.mubr.msk.bf16.mxu0 %vm689_vm3, %v5715_v42  ;;  %v1834_v38 = vrot.slane %v1833_v29, 4 }
  0xac   : > { %3838 = vmatprep.subr.msk.bf16.mxu0 %vm738_vm0, %v3342_v55 }
  0xad   : > { %3626 = vmatmul.mubr.msk.bf16.vlgmr.msra.gmra.mxu1 %vm689_vm3, %v4463_v63  ;;  %v1839_v25 = vsel %vm4101_vm4, %v1834_v38, %v1838_v44 }
  0xae   : > { %3692 = vmatpush3.bf16.msra.mxu1 %v2071_v31  ;;  %3629 = vmatprep.mubr.msk.bf16.mxu1 %vm689_vm3, %v4554_v53  ;;  %v1844_v31 = vrot.slane %v1843_v24, 4 }
  0xaf   : > { %3837 = vmatprep.subr.msk.bf16.mxu1 %vm738_vm0, %v3323_v45 }
  0xb0   : > { %v1849_v41 = vsel %vm4101_vm4, %v1844_v31, %v1848_v27 }
  0xb1   : > { %v4831_v54 = vcombine.low %v1839_v25, %v1849_v41 }
  0xb2   : > { %3664 = vmatmul.mubr.msk.bf16.gmra.mxu0 %vm689_vm3, %v5716_v46 }
  0xb3   : > { %3667 = vmatprep.mubr.msk.bf16.mxu0 %vm689_vm3, %v5717_v19  ;;  %5725 = vst [vmem:[#allocation19_spill] sm:$0xff] %v4831_v54 }
  0xb5   : > { %3630 = vmatmul.mubr.msk.bf16.gmra.mxu1 %vm689_vm3, %v4558_v33 }
  0xb6   : > { %3633 = vmatprep.mubr.msk.bf16.mxu1 %vm689_vm3, %v4562_v56 }
  0xba   : > { %3668 = vmatmul.mubr.msk.bf16.gmra.mxu0 %vm689_vm3, %v5718_v36 }
  0xbb   : > { %3671 = vmatprep.mubr.msk.bf16.mxu0 %vm689_vm3, %v4445_v15 }
  0xbd   : > { %3634 = vmatmul.mubr.msk.bf16.gmra.mxu1 %vm689_vm3, %v4566_v17 }
  0xbe   : > { %3637 = vmatprep.mubr.msk.bf16.mxu1 %vm689_vm3, %v4674_v20 }
  0xc2   : > { %3672 = vmatmul.mubr.msk.bf16.gmra.mxu0 %vm689_vm3, %v5719_v26 }
  0xc3   : > { %3675 = vmatprep.mubr.msk.bf16.mxu0 %vm689_vm3, %v5720_v0 }
  0xc5   : > { %3638 = vmatmul.mubr.msk.bf16.gmra.mxu1 %vm689_vm3, %v4680_v48 }
  0xc6   : > { %3641 = vmatprep.mubr.msk.bf16.mxu1 %vm689_vm3, %v4702_v39 }
  0xca   : > { %3676 = vmatmul.mubr.msk.bf16.gmra.mxu0 %vm689_vm3, %v5721_v35 }
  0xcb   : > { %3679 = vmatprep.mubr.msk.bf16.mxu0 %vm689_vm3, %v5722_v40 }
  0xcd   : > { %3642 = vmatmul.mubr.msk.bf16.gmra.mxu1 %vm689_vm3, %v4708_v22 }
  0xce   : > { %3645 = vmatprep.mubr.msk.bf16.mxu1 %vm689_vm3, %v4577_v18 }
  0xd2   : > { %3680 = vmatmul.mubr.msk.bf16.gmra.mxu0 %vm689_vm3, %v5723_v57 }
  0xd3   : > { %3683 = vmatprep.mubr.msk.bf16.mxu0 %vm689_vm3, %v5724_v7 }
  0xd5   : > { %3646 = vmatmul.mubr.msk.bf16.gmra.mxu1 %vm689_vm3, %v4590_v6 }
  0xd6   : > { %3649 = vmatprep.mubr.msk.bf16.mxu1 %vm689_vm3, %v4604_v43 }
  0xda   : > { %3684 = vmatmul.mubr.msk.bf16.gmra.mxu0 %vm689_vm3, %v4419_v5 }
  0xdb   : > { %3687 = vmatprep.mubr.msk.bf16.mxu0 %vm689_vm3, %v4473_v12 }
  0xdd   : > { %3650 = vmatmul.mubr.msk.bf16.gmra.mxu1 %vm689_vm3, %v4619_v28 }
  0xde   : > { %3653 = vmatprep.mubr.msk.bf16.mxu1 %vm689_vm3, %v4634_v9 }
  0xe2   : > { %3688 = vmatmul.mubr.msk.bf16.gmra.mxu0 %vm689_vm3, %v4831_v54 }
  0xe3   : > { %3727 = vmatprep.mubr.msk.bf16.mxu0 %vm689_vm3, %v4463_v63 }
  0xe5   : > { %3654 = vmatmul.mubr.msk.bf16.gmra.mxu1 %vm689_vm3, %v3251_v3 }
  0xe6   : > { %3693 = vmatprep.mubr.msk.bf16.mxu1 %vm689_vm3, %v4470_v47 }
  0xea   : > { %3728 = vmatmul.mubr.msk.bf16.vlgmr.msra.gmra.mxu0 %vm689_vm3, %v4554_v53 }
  0xeb   : > { %3794 = vmatpush3.bf16.msra.mxu0 %v2717_v51  ;;  %3731 = vmatprep.mubr.msk.bf16.mxu0 %vm689_vm3, %v4558_v33 }
  0xed   : > { %3694 = vmatmul.mubr.msk.bf16.vlgmr.msra.gmra.mxu1 %vm689_vm3, %v4493_v37 }
  0xee   : > { %3760 = vmatpush3.bf16.msra.mxu1 %v2505_v62  ;;  %3697 = vmatprep.mubr.msk.bf16.mxu1 %vm689_vm3, %v4533_v14  ;;  %v4854_v63 = vpop.f32.mrf.mxu0 }
  0xf0   : > { %v4864_v53 = vpop.f32.mrf.mxu0 }
  0xf2   : > { %3732 = vmatmul.mubr.msk.bf16.gmra.mxu0 %vm689_vm3, %v4562_v56  ;;  %v4870_v56 = vpop.f32.mrf.mxu0 }
  0xf3   : > { %3735 = vmatprep.mubr.msk.bf16.mxu0 %vm689_vm3, %v4566_v17  ;;  %v4860_v47 = vpop.f32.mrf.mxu1 }
  0xf4   : > { %v4880_v59 = vpop.f32.mrf.mxu0 }
  0xf5   : > { %3698 = vmatmul.mubr.msk.bf16.gmra.mxu1 %vm689_vm3, %v4535_v10  ;;  %v4866_v33 = vpop.f32.mrf.mxu1 }
  0xf6   : > { %3701 = vmatprep.mubr.msk.bf16.mxu1 %vm689_vm3, %v4570_v30 }
  0xf7   : > { %v4876_v17 = vpop.f32.mrf.mxu1 }
  0xf9   : > { %v4882_v4 = vpop.f32.mrf.mxu1 }
  0xfa   : > { %3736 = vmatmul.mubr.msk.bf16.gmra.mxu0 %vm689_vm3, %v4674_v20 }
  0xfb   : > { %3739 = vmatprep.mubr.msk.bf16.mxu0 %vm689_vm3, %v4680_v48 }
  0xfd   : > { %3702 = vmatmul.mubr.msk.bf16.gmra.mxu1 %vm689_vm3, %v4572_v1 }
  0xfe   : > { %3705 = vmatprep.mubr.msk.bf16.mxu1 %vm689_vm3, %v4658_v23 }
  0xff   : > { %v4886_v20 = vpop.f32.mrf.mxu0 }
 0x101   : > { %v4896_v55 = vpop.f32.mrf.mxu0 }
 0x102   : > { %3740 = vmatmul.mubr.msk.bf16.gmra.mxu0 %vm689_vm3, %v4702_v39 }
 0x103   : > { %3743 = vmatprep.mubr.msk.bf16.mxu0 %vm689_vm3, %v4708_v22  ;;  %v4892_v48 = vpop.f32.mrf.mxu1  ;;  %v4902_v39 = vpop.f32.mrf.mxu0 }
 0x105   : > { %3706 = vmatmul.mubr.msk.bf16.gmra.mxu1 %vm689_vm3, %v4663_v8  ;;  %v4898_v45 = vpop.f32.mrf.mxu1  ;;  %v4912_v44 = vpop.f32.mrf.mxu0 }
 0x106   : > { %3709 = vmatprep.mubr.msk.bf16.mxu1 %vm689_vm3, %v4696_v13 }
 0x107   : > { %v4908_v22 = vpop.f32.mrf.mxu1 }
 0x109   : > { %v4914_v49 = vpop.f32.mrf.mxu1 }
 0x10a   : > { %3744 = vmatmul.mubr.msk.bf16.gmra.mxu0 %vm689_vm3, %v4577_v18 }
 0x10b   : > { %3747 = vmatprep.mubr.msk.bf16.mxu0 %vm689_vm3, %v4590_v6 }
 0x10d   : > { %3710 = vmatmul.mubr.msk.bf16.gmra.mxu1 %vm689_vm3, %v4698_v16 }
 0x10e   : > { %3713 = vmatprep.mubr.msk.bf16.mxu1 %vm689_vm3, %v4613_v21 }
 0x110   : > { %v4918_v18 = vpop.f32.mrf.mxu0 }
 0x112   : > { %3748 = vmatmul.mubr.msk.bf16.gmra.mxu0 %vm689_vm3, %v4604_v43  ;;  %v4928_v29 = vpop.f32.mrf.mxu0 }
 0x113   : > { %3751 = vmatprep.mubr.msk.bf16.mxu0 %vm689_vm3, %v4619_v28  ;;  %v4938_v28 = vld [vmem:[%s4056_s11 + $0xcc] sm:$0xf] }
 0x114   : > { %v4934_v43 = vpop.f32.mrf.mxu0 }
 0x115   : > { %3714 = vmatmul.mubr.msk.bf16.gmra.mxu1 %vm689_vm3, %v4628_v50  ;;  %v4924_v6 = vpop.f32.mrf.mxu1 }
 0x116   : > { %5726 = vst [vmem:[#allocation23_spill] sm:$0xff] %v4924_v6  ;;  %3717 = vmatprep.mubr.msk.bf16.mxu1 %vm689_vm3, %v4650_v52  ;;  %v4947_v31 = vpop.f32.mrf.mxu0 }
 0x117   : > { %v4930_v24 = vpop.f32.mrf.mxu1 }
 0x118   : > { %5727 = vst [vmem:[#allocation21_spill] sm:$0xff] %v4930_v24 }
 0x119   : > { %v4945_v38 = vpop.f32.mrf.mxu1 }
 0x11a   : > { %3752 = vmatmul.mubr.msk.bf16.gmra.mxu0 %vm689_vm3, %v4634_v9  ;;  %5728 = vst [vmem:[#allocation24_spill] sm:$0xff] %v4945_v38  ;;  %v3306_v9 = vcombine.low %v4938_v28, %v4941_v61 }
 0x11b   : > { %3755 = vmatprep.mubr.msk.bf16.mxu0 %vm689_vm3, %v3251_v3  ;;  %v4953_v27 = vpop.f32.mrf.mxu1 }
 0x11c   : > { %5729 = vst [vmem:[#allocation26_spill] sm:$0xff] %v4953_v27 }
 0x11d   : > { %3718 = vmatmul.mubr.msk.bf16.gmra.mxu1 %vm689_vm3, %v4661_v58 }
 0x11e   : > { %3721 = vmatprep.mubr.msk.bf16.mxu1 %vm689_vm3, %v4670_v2 }
 0x122   : > { %v4955_v25 = vpop.f32.mrf.mxu0  ;;  %3756 = vmatmul.mubr.msk.bf16.gmra.mxu0 %vm689_vm3, %v3306_v9 }
 0x123   : > { %3795 = vmatprep.mubr.msk.bf16.mxu0 %vm689_vm3, %v4493_v37 }
 0x124   : > { %v4960_v41 = vpop.f32.mrf.mxu0 }
 0x125   : > { %v4962_v3 = vpop.f32.mrf.mxu1  ;;  %3722 = vmatmul.mubr.msk.bf16.gmra.mxu1 %vm689_vm3, %v4749_v11 }
 0x126   : > { %5730 = vst [vmem:[#allocation11_spill] sm:$0xff] %v4962_v3  ;;  %v4966_v51 = vpop.f32.mrf.mxu0  ;;  %3761 = vmatprep.mubr.msk.bf16.mxu1 %vm689_vm3, %v5714_v34 }
 0x127   : > { %v4970_v62 = vpop.f32.mrf.mxu1 }
 0x128   : > { %5731 = vst [vmem:[#allocation6_spill] sm:$0xff] %v4970_v62  ;;  %v4972_v27 = vpop.f32.mrf.mxu0 }
 0x129   : > { %v4974_v9 = vpop.f32.mrf.mxu1 }
 0x12a   : > { %5732 = vst [vmem:[#allocation7_spill] sm:$0xff] %v4974_v9  ;;  %v3593_v38 = vpop.f32.mrf.mxu0  ;;  %3796 = vmatmul.mubr.msk.bf16.vlgmr.msra.gmra.mxu0 %vm689_vm3, %v4533_v14 }
 0x12b   : > { %v4978_v37 = vpop.f32.mrf.mxu1  ;;  %3799 = vmatprep.mubr.msk.bf16.mxu0 %vm689_vm3, %v4535_v10 }
 0x12c   : > { %5733 = vst [vmem:[#allocation9_spill] sm:$0xff] %v4978_v37  ;;  %v1461_v3 = vpop.f32.mrf.mxu0 }
 0x12d   : > { %v3559_v24 = vpop.f32.mrf.mxu1  ;;  %3762 = vmatmul.mubr.msk.bf16.vlgmr.msra.gmra.mxu1 %vm689_vm3, %v5715_v42 }
 0x12e   : > { %v1077_v34 = vadd.f32 %v3559_v24, %v4854_v63  ;;  %v3594_v62 = vpop.f32.mrf.mxu0  ;;  %3765 = vmatprep.mubr.msk.bf16.mxu1 %vm689_vm3, %v5716_v46 }
 0x12f   : > { %v1068_v9 = vpop.f32.mrf.mxu1 }
 0x130   : > { %v4987_v54 = vadd.f32 %v3593_v38, %v1077_v34  ;;  %v1069_v14 = vadd.f32 %v1068_v9, %v4864_v53  ;;  %v1464_v37 = vpop.f32.mrf.mxu0 }
 0x131   : > { %v3560_v6 = vpop.f32.mrf.mxu1 }
 0x132   : > { %v4990_v32 = vadd.f32 %v1461_v3, %v1069_v14  ;;  %v1080_v10 = vadd.f32 %v3560_v6, %v4870_v56  ;;  %v3597_v12 = vpop.f32.mrf.mxu0  ;;  %3800 = vmatmul.mubr.msk.bf16.gmra.mxu0 %vm689_vm3, %v4570_v30 }
 0x133   : > { %v1071_v42 = vpop.f32.mrf.mxu1  ;;  %3803 = vmatprep.mubr.msk.bf16.mxu0 %vm689_vm3, %v4572_v1 }
 0x134   : > { %v4997_v46 = vadd.f32 %v3594_v62, %v1080_v10  ;;  %v1072_v63 = vadd.f32 %v1071_v42, %v4880_v59  ;;  %v1477_v24 = vpop.f32.mrf.mxu0 }
 0x135   : > { %v3563_v53 = vpop.f32.mrf.mxu1  ;;  %3766 = vmatmul.mubr.msk.bf16.gmra.mxu1 %vm689_vm3, %v5717_v19 }
 0x136   : > { %v5002_v38 = vadd.f32 %v1464_v37, %v1072_v63  ;;  %v1093_v56 = vadd.f32 %v3563_v53, %v4886_v20  ;;  %v3598_v6 = vpop.f32.mrf.mxu0  ;;  %3769 = vmatprep.mubr.msk.bf16.mxu1 %vm689_vm3, %v5718_v36 }
 0x137   : > { %v1084_v30 = vpop.f32.mrf.mxu1 }
 0x138   : > { %v5007_v3 = vadd.f32 %v3597_v12, %v1093_v56  ;;  %v1085_v1 = vadd.f32 %v1084_v30, %v4896_v55  ;;  %v1480_v62 = vpop.f32.mrf.mxu0 }
 0x139   : > { %v3564_v59 = vpop.f32.mrf.mxu1 }
 0x13a   : > { %v5010_v9 = vadd.f32 %v1477_v24, %v1085_v1  ;;  %v1096_v34 = vadd.f32 %v3564_v59, %v4902_v39  ;;  %v3601_v19 = vpop.f32.mrf.mxu0  ;;  %3804 = vmatmul.mubr.msk.bf16.gmra.mxu0 %vm689_vm3, %v4658_v23 }
 0x13b   : > { %v1087_v20 = vpop.f32.mrf.mxu1  ;;  %3807 = vmatprep.mubr.msk.bf16.mxu0 %vm689_vm3, %v4663_v8 }
 0x13c   : > { %v5017_v36 = vadd.f32 %v3598_v6, %v1096_v34  ;;  %v1088_v12 = vadd.f32 %v1087_v20, %v4912_v44  ;;  %v1493_v37 = vpop.f32.mrf.mxu0 }
 0x13d   : > { %v3567_v55 = vpop.f32.mrf.mxu1  ;;  %3770 = vmatmul.mubr.msk.bf16.gmra.mxu1 %vm689_vm3, %v4445_v15 }
 0x13e   : > { %v5022_v14 = vadd.f32 %v1480_v62, %v1088_v12  ;;  %v1109_v39 = vadd.f32 %v3567_v55, %v4918_v18  ;;  %v3602_v10 = vpop.f32.mrf.mxu0  ;;  %3773 = vmatprep.mubr.msk.bf16.mxu1 %vm689_vm3, %v5719_v26 }
 0x13f   : > { %v1100_v23 = vpop.f32.mrf.mxu1 }
 0x140   : > { %v5027_v42 = vadd.f32 %v3601_v19, %v1109_v39  ;;  %v1101_v8 = vadd.f32 %v1100_v23, %v4928_v29  ;;  %v1496_v63 = vpop.f32.mrf.mxu0 }
 0x141   : > { %v3568_v44 = vpop.f32.mrf.mxu1 }
 0x142   : > { %v5030_v24 = vadd.f32 %v1493_v37, %v1101_v8  ;;  %v1112_v53 = vadd.f32 %v3568_v44, %v4934_v43  ;;  %v3605_v15 = vpop.f32.mrf.mxu0  ;;  %3808 = vmatmul.mubr.msk.bf16.gmra.mxu0 %vm689_vm3, %v4696_v13  ;;  %v2476_v37 = vshll.u32 %v4938_v28, 16 }
 0x143   : > { %v1103_v18 = vpop.f32.mrf.mxu1  ;;  %3811 = vmatprep.mubr.msk.bf16.mxu0 %vm689_vm3, %v4698_v16 }
 0x144   : > { %v5037_v26 = vadd.f32 %v3602_v10, %v1112_v53  ;;  %v1104_v56 = vadd.f32 %v1103_v18, %v4947_v31  ;;  %v1509_v6 = vpop.f32.mrf.mxu0  ;;  %v2478_v44 = vrot.slane %v2476_v37, 5 }
 0x145   : > { %v3571_v29 = vpop.f32.mrf.mxu1  ;;  %3774 = vmatmul.mubr.msk.bf16.gmra.mxu1 %vm689_vm3, %v5720_v0 }
 0x146   : > { %v5042_v30 = vadd.f32 %v1496_v63, %v1104_v56  ;;  %v1125_v43 = vadd.f32 %v3571_v29, %v4955_v25  ;;  %v3606_v1 = vpop.f32.mrf.mxu0  ;;  %3777 = vmatprep.mubr.msk.bf16.mxu1 %vm689_vm3, %v5721_v35 }
 0x147   : > { %v1116_v13 = vpop.f32.mrf.mxu1 }
 0x148   : > { %v5047_v62 = vadd.f32 %v3605_v15, %v1125_v43  ;;  %v1117_v16 = vadd.f32 %v1116_v13, %v4960_v41  ;;  %v1512_v59 = vpop.f32.mrf.mxu0  ;;  %v2473_v41 = vshrl.u32 %v4938_v28, 16 }
 0x149   : > { %v3572_v31 = vpop.f32.mrf.mxu1 }
 0x14a   : > { %v5050_v34 = vadd.f32 %v1509_v6, %v1117_v16  ;;  %v1128_v19 = vadd.f32 %v3572_v31, %v4966_v51  ;;  %v3609_v0 = vpop.f32.mrf.mxu0  ;;  %3812 = vmatmul.mubr.msk.bf16.gmra.mxu0 %vm689_vm3, %v4613_v21  ;;  %v2482_v51 = vshll.u32 %v4941_v61, 16  ;;  %v2486_v21 = vshrl.u32 %v4941_v61, 16 }
 0x14b   : > { %v1119_v25 = vpop.f32.mrf.mxu1  ;;  %3815 = vmatprep.mubr.msk.bf16.mxu0 %vm689_vm3, %v4628_v50 }
 0x14c   : > { %v5057_v35 = vadd.f32 %v3606_v1, %v1128_v19  ;;  %v1120_v20 = vadd.f32 %v1119_v25, %v4972_v27  ;;  %v1525_v12 = vpop.f32.mrf.mxu0  ;;  %v2484_v15 = vrot.slane %v2482_v51, 5  ;;  %v2488_v18 = vrot.slane %v2486_v21, 4 }
 0x14d   : > { %v3575_v55 = vpop.f32.mrf.mxu1  ;;  %3778 = vmatmul.mubr.msk.bf16.gmra.mxu1 %vm689_vm3, %v5722_v40  ;;  %v2475_v40 = vrot.slane %v2473_v41, 4  ;;  %v3341_v19 = vrot.slane %v4938_v28, 9 }
 0x14e   : > { %v5066_v39 = vadd.f32 %v1512_v59, %v1120_v20  ;;  %v1141_v50 = vadd.f32 %v3575_v55, %v4860_v47  ;;  %v3610_v10 = vpop.f32.mrf.mxu0  ;;  %3781 = vmatprep.mubr.msk.bf16.mxu1 %vm689_vm3, %v5723_v57  ;;  %v2703_v57 = vrot.slane %v4941_v61, 5 }
 0x14f   : > { %v1132_v27 = vpop.f32.mrf.mxu1 }
 0x150   : > { %v5071_v23 = vadd.f32 %v3609_v0, %v1141_v50  ;;  %v1133_v8 = vadd.f32 %v1132_v27, %v4866_v33  ;;  %v1528_v63 = vpop.f32.mrf.mxu0  ;;  %v250_v33 = vld [vmem:[%s4056_s11 + $0xd4] sm:$0x1] }
 0x151   : > { %v3576_v53 = vpop.f32.mrf.mxu1  ;;  %v2492_v31 = vshll.u32 %v250_v33, 16  ;;  %v2706_v25 = vrot.slane %v250_v33, 5 }
 0x152   : > { %v5074_v56 = vadd.f32 %v1525_v12, %v1133_v8  ;;  %v1144_v47 = vadd.f32 %v3576_v53, %v4876_v17  ;;  %v3613_v6 = vpop.f32.mrf.mxu0  ;;  %3816 = vmatmul.mubr.msk.bf16.gmra.mxu0 %vm689_vm3, %v4650_v52  ;;  %v2479_v17 = vor.u32 %v2478_v44, %v2475_v40 }
 0x153   : > { %v1135_v29 = vpop.f32.mrf.mxu1  ;;  %3819 = vmatprep.mubr.msk.bf16.mxu0 %vm689_vm3, %v4661_v58  ;;  %v2489_v58 = vor.u32 %v2488_v18, %v2484_v15  ;;  %v2494_v28 = vrot.slane %v2492_v31, 5 }
 0x154   : > { %v5083_v43 = vadd.f32 %v3610_v10, %v1144_v47  ;;  %v1136_v1 = vadd.f32 %v1135_v29, %v4882_v4  ;;  %v1541_v13 = vpop.f32.mrf.mxu0  ;;  %v2705_v4 = vrot.slane %v2703_v57, 4  ;;  %v2480_v37 = vrot.slane %v2479_v17, 4  ;;  %v5737_v47 = vld [vmem:[#allocation19_spill] sm:$0xff]  ;;  %v5738_v29 = vld [vmem:[#allocation21_spill] sm:$0xff]  ;;  %v5739_v17 = vld [vmem:[#allocation24_spill] sm:$0xff] }
 0x155   : > { %v3579_v16 = vpop.f32.mrf.mxu1  ;;  %3782 = vmatmul.mubr.msk.bf16.gmra.mxu1 %vm689_vm3, %v5724_v7 }
 0x156   : > { %v5088_v59 = vadd.f32 %v1528_v63, %v1136_v1  ;;  %v1157_v52 = vadd.f32 %v3579_v16, %v4892_v48  ;;  %v3614_v61 = vpop.f32.mrf.mxu0  ;;  %3785 = vmatprep.mubr.msk.bf16.mxu1 %vm689_vm3, %v4419_v5  ;;  %v2490_v5 = vrot.slane %v2489_v58, 4  ;;  %v2707_v50 = vsel %vm4424_vm7, %v2705_v4, %v2706_v25  ;;  %v5734_v63 = vld [vmem:[#allocation28_spill] sm:$0xff] }
 0x157   : > { %v1148_v0 = vpop.f32.mrf.mxu1  ;;  %v2485_v40 = vsel %vm4101_vm4, %v2480_v37, %v2484_v15 }
 0x158   : > { %v5094_v20 = vadd.f32 %v3613_v6, %v1157_v52  ;;  %v1149_v7 = vadd.f32 %v1148_v0, %v4898_v45  ;;  %v1544_v12 = vpop.f32.mrf.mxu0  ;;  %v2704_v45 = vsel %vm4424_vm7, %v3341_v19, %v2703_v57  ;;  %v2495_v60 = vsel %vm4101_vm4, %v2490_v5, %v2494_v28  ;;  %v5740_v19 = vld [vmem:[#allocation26_spill] sm:$0xff] }
 0x159   : > { %v3580_v41 = vpop.f32.mrf.mxu1  ;;  %v3324_v15 = vcombine.low %v2485_v40, %v2495_v60  ;;  %v5742_v5 = vld [vmem:[#allocation6_spill] sm:$0xff]  ;;  %v5744_v40 = vld [vmem:[#allocation9_spill] sm:$0xff] }
 0x15a   : > { %v5097_v55 = vadd.f32 %v1541_v13, %v1149_v7  ;;  %v1160_v48 = vadd.f32 %v3580_v41, %v4908_v22  ;;  %v3617_v51 = vpop.f32.mrf.mxu0  ;;  %3820 = vmatmul.mubr.msk.bf16.gmra.mxu0 %vm689_vm3, %v4670_v2 }
 0x15b   : > { %v1151_v21 = vpop.f32.mrf.mxu1  ;;  %3823 = vmatprep.mubr.msk.bf16.mxu0 %vm689_vm3, %v4749_v11  ;;  %v5736_v11 = vld [vmem:[#allocation23_spill] sm:$0xff] }
 0x15c   : > { %v5108_v10 = vadd.f32 %v3614_v61, %v1160_v48  ;;  %v1152_v22 = vadd.f32 %v1151_v21, %v4914_v49  ;;  %v1557_v27 = vpop.f32.mrf.mxu0  ;;  %v3343_v49 = vcombine.low %v2704_v45, %v2707_v50 }
 0x15d   : > { %v3583_v8 = vpop.f32.mrf.mxu1  ;;  %3786 = vmatmul.mubr.msk.bf16.gmra.mxu1 %vm689_vm3, %v5734_v63 }
 0x15e   : > { %v5115_v44 = vadd.f32 %v1544_v12, %v1152_v22  ;;  %v1173_v53 = vadd.f32 %v3583_v8, %v5736_v11  ;;  %v3618_v18 = vpop.f32.mrf.mxu0  ;;  %3789 = vmatprep.mubr.msk.bf16.mxu1 %vm689_vm3, %v5737_v47  ;;  %v5741_v12 = vld [vmem:[#allocation11_spill] sm:$0xff] }
 0x15f   : > { %v1164_v6 = vpop.f32.mrf.mxu1  ;;  %v5743_v22 = vld [vmem:[#allocation7_spill] sm:$0xff] }
 0x160   : > { %v5122_v57 = vadd.f32 %v3617_v51, %v1173_v53  ;;  %v1165_v33 = vadd.f32 %v1164_v6, %v5738_v29  ;;  %v1560_v1 = vpop.f32.mrf.mxu0 }
 0x161   : > { %v3584_v13 = vpop.f32.mrf.mxu1 }
 0x162   : > { %v5125_v16 = vadd.f32 %v1557_v27, %v1165_v33  ;;  %v1176_v52 = vadd.f32 %v3584_v13, %v5739_v17  ;;  %v3621_v61 = vpop.f32.mrf.mxu0  ;;  %3824 = vmatmul.mubr.msk.bf16.gmra.mxu0 %vm689_vm3, %v3343_v49 }
 0x163   : > { %v1167_v58 = vpop.f32.mrf.mxu1 }
 0x164   : > { %v5129_v31 = vadd.f32 %v3618_v18, %v1176_v52  ;;  %v1168_v0 = vadd.f32 %v1167_v58, %v5740_v19  ;;  %v1573_v4 = vpop.f32.mrf.mxu0 }
 0x165   : > { %v3587_v25 = vpop.f32.mrf.mxu1  ;;  %3790 = vmatmul.mubr.msk.bf16.gmra.mxu1 %vm689_vm3, %v3324_v15 }
 0x166   : > { %v5133_v7 = vadd.f32 %v1560_v1, %v1168_v0  ;;  %v1189_v41 = vadd.f32 %v3587_v25, %v5741_v12  ;;  %v3622_v37 = vpop.f32.mrf.mxu0 }
 0x167   : > { %v1180_v48 = vpop.f32.mrf.mxu1 }
 0x168   : > { %v5136_v51 = vadd.f32 %v3621_v61, %v1189_v41  ;;  %v1181_v28 = vadd.f32 %v1180_v48, %v5742_v5  ;;  %v1576_v21 = vpop.f32.mrf.mxu0 }
 0x169   : > { %v3588_v45 = vpop.f32.mrf.mxu1 }
 0x16a   : > { %v5139_v50 = vadd.f32 %v1573_v4, %v1181_v28  ;;  %v1192_v27 = vadd.f32 %v3588_v45, %v5743_v22  ;;  %v3661_v8 = vpop.f32.mrf.mxu0 }
 0x16b   : > { %v1183_v63 = vpop.f32.mrf.mxu1 }
 0x16c   : > { %v5142_v2 = vadd.f32 %v3622_v37, %v1192_v27  ;;  %v1184_v11 = vadd.f32 %v1183_v63, %v5744_v40  ;;  %v1895_v53 = vpop.f32.mrf.mxu0 }
 0x16d   : > { %v3627_v18 = vpop.f32.mrf.mxu1 }
 0x16e   : > { %v5145_v47 = vadd.f32 %v1576_v21, %v1184_v11  ;;  %v1796_v60 = vadd.f32 %v3627_v18, %v4987_v54  ;;  %v3662_v49 = vpop.f32.mrf.mxu0 }
 0x16f   : > { %v1667_v6 = vpop.f32.mrf.mxu1 }
 0x170   : > { %v5148_v29 = vadd.f32 %v3661_v8, %v1796_v60  ;;  %v1794_v33 = vadd.f32 %v1667_v6, %v4990_v32  ;;  %v1898_v1 = vpop.f32.mrf.mxu0 }
 0x171   : > { %v3628_v13 = vpop.f32.mrf.mxu1 }
 0x172   : > { %v5151_v15 = vadd.f32 %v1895_v53, %v1794_v33  ;;  %v1797_v17 = vadd.f32 %v3628_v13, %v4997_v46  ;;  %v3665_v52 = vpop.f32.mrf.mxu0 }
 0x173   : > { %v1670_v61 = vpop.f32.mrf.mxu1 }
 0x174   : > { %v5154_v58 = vadd.f32 %v3662_v49, %v1797_v17  ;;  %v1795_v19 = vadd.f32 %v1670_v61, %v5002_v38  ;;  %v1911_v0 = vpop.f32.mrf.mxu0 }
 0x175   : > { %v3631_v54 = vpop.f32.mrf.mxu1 }
 0x176   : > { %v5157_v4 = vadd.f32 %v1898_v1, %v1795_v19  ;;  %v1800_v25 = vadd.f32 %v3631_v54, %v5007_v3  ;;  %v3666_v12 = vpop.f32.mrf.mxu0 }
 0x177   : > { %v1683_v32 = vpop.f32.mrf.mxu1 }
 0x178   : > { %v5160_v41 = vadd.f32 %v3665_v52, %v1800_v25  ;;  %v1798_v37 = vadd.f32 %v1683_v32, %v5010_v9  ;;  %v1914_v48 = vpop.f32.mrf.mxu0 }
 0x179   : > { %v3632_v46 = vpop.f32.mrf.mxu1 }
 0x17a   : > { %v5163_v5 = vadd.f32 %v1911_v0, %v1798_v37  ;;  %v1801_v28 = vadd.f32 %v3632_v46, %v5017_v36  ;;  %v3669_v21 = vpop.f32.mrf.mxu0 }
 0x17b   : > { %v1686_v38 = vpop.f32.mrf.mxu1 }
 0x17c   : > { %v5166_v45 = vadd.f32 %v3666_v12, %v1801_v28  ;;  %v1799_v22 = vadd.f32 %v1686_v38, %v5022_v14  ;;  %v1927_v27 = vpop.f32.mrf.mxu0 }
 0x17d   : > { %v3635_v3 = vpop.f32.mrf.mxu1 }
 0x17e   : > { %v5169_v8 = vadd.f32 %v1914_v48, %v1799_v22  ;;  %v1804_v63 = vadd.f32 %v3635_v3, %v5027_v42  ;;  %v3670_v40 = vpop.f32.mrf.mxu0 }
 0x17f   : > { %v1699_v9 = vpop.f32.mrf.mxu1 }
 0x180   : > { %v5172_v11 = vadd.f32 %v3669_v21, %v1804_v63  ;;  %v1802_v53 = vadd.f32 %v1699_v9, %v5030_v24  ;;  %v1930_v18 = vpop.f32.mrf.mxu0 }
 0x181   : > { %v3636_v36 = vpop.f32.mrf.mxu1 }
 0x182   : > { %v5175_v60 = vadd.f32 %v1927_v27, %v1802_v53  ;;  %v1805_v49 = vadd.f32 %v3636_v36, %v5037_v26  ;;  %v3673_v6 = vpop.f32.mrf.mxu0 }
 0x183   : > { %v1702_v14 = vpop.f32.mrf.mxu1 }
 0x184   : > { %v5178_v33 = vadd.f32 %v3670_v40, %v1805_v49  ;;  %v1803_v1 = vadd.f32 %v1702_v14, %v5042_v30  ;;  %v1943_v13 = vpop.f32.mrf.mxu0 }
 0x185   : > { %v3639_v42 = vpop.f32.mrf.mxu1 }
 0x186   : > { %v5181_v17 = vadd.f32 %v1930_v18, %v1803_v1  ;;  %v1808_v52 = vadd.f32 %v3639_v42, %v5047_v62  ;;  %v3674_v61 = vpop.f32.mrf.mxu0 }
 0x187   : > { %v1715_v24 = vpop.f32.mrf.mxu1 }
 0x188   : > { %v5184_v19 = vadd.f32 %v3673_v6, %v1808_v52  ;;  %v1806_v0 = vadd.f32 %v1715_v24, %v5050_v34  ;;  %v1946_v54 = vpop.f32.mrf.mxu0 }
 0x189   : > { %v3640_v26 = vpop.f32.mrf.mxu1 }
 0x18a   : > { %v5187_v25 = vadd.f32 %v1943_v13, %v1806_v0  ;;  %v1809_v12 = vadd.f32 %v3640_v26, %v5057_v35  ;;  %v3677_v32 = vpop.f32.mrf.mxu0 }
 0x18b   : > { %v1718_v30 = vpop.f32.mrf.mxu1 }
 0x18c   : > { %v5190_v37 = vadd.f32 %v3674_v61, %v1809_v12  ;;  %v1807_v48 = vadd.f32 %v1718_v30, %v5066_v39  ;;  %v1959_v46 = vpop.f32.mrf.mxu0 }
 0x18d   : > { %v3643_v62 = vpop.f32.mrf.mxu1 }
 0x18e   : > { %v5193_v28 = vadd.f32 %v1946_v54, %v1807_v48  ;;  %v1812_v21 = vadd.f32 %v3643_v62, %v5071_v23  ;;  %v3678_v38 = vpop.f32.mrf.mxu0 }
 0x18f   : > { %v1731_v34 = vpop.f32.mrf.mxu1 }
 0x190   : > { %v5196_v22 = vadd.f32 %v3677_v32, %v1812_v21  ;;  %v1810_v27 = vadd.f32 %v1731_v34, %v5074_v56  ;;  %v1962_v3 = vpop.f32.mrf.mxu0 }
 0x191   : > { %v3644_v35 = vpop.f32.mrf.mxu1 }
 0x192   : > { %v5199_v63 = vadd.f32 %v1959_v46, %v1810_v27  ;;  %v1813_v40 = vadd.f32 %v3644_v35, %v5083_v43  ;;  %v3681_v9 = vpop.f32.mrf.mxu0 }
 0x193   : > { %v1734_v39 = vpop.f32.mrf.mxu1 }
 0x194   : > { %v5202_v53 = vadd.f32 %v3678_v38, %v1813_v40  ;;  %v1811_v18 = vadd.f32 %v1734_v39, %v5088_v59  ;;  %v1975_v36 = vpop.f32.mrf.mxu0 }
 0x195   : > { %v3647_v23 = vpop.f32.mrf.mxu1 }
 0x196   : > { %5745 = vst [vmem:[#allocation12_spill] sm:$0xff] %v5202_v53  ;;  %v5205_v49 = vadd.f32 %v1962_v3, %v1811_v18  ;;  %v1816_v6 = vadd.f32 %v3647_v23, %v5094_v20  ;;  %v3682_v14 = vpop.f32.mrf.mxu0 }
 0x197   : > { %v1747_v56 = vpop.f32.mrf.mxu1 }
 0x198   : > { %5746 = vst [vmem:[#allocation10_spill] sm:$0xff] %v5205_v49  ;;  %v5208_v1 = vadd.f32 %v3681_v9, %v1816_v6  ;;  %v1814_v13 = vadd.f32 %v1747_v56, %v5097_v55  ;;  %v1978_v42 = vpop.f32.mrf.mxu0 }
 0x199   : > { %v3648_v43 = vpop.f32.mrf.mxu1 }
 0x19a   : > { %5747 = vst [vmem:[#allocation14_spill] sm:$0xff] %v5208_v1  ;;  %v5211_v52 = vadd.f32 %v1975_v36, %v1814_v13  ;;  %v1817_v61 = vadd.f32 %v3648_v43, %v5108_v10  ;;  %v3685_v24 = vpop.f32.mrf.mxu0 }
 0x19b   : > { %v1750_v59 = vpop.f32.mrf.mxu1 }
 0x19c   : > { %5748 = vst [vmem:[#allocation16_spill] sm:$0xff] %v5211_v52  ;;  %v5214_v0 = vadd.f32 %v3682_v14, %v1817_v61  ;;  %v1815_v54 = vadd.f32 %v1750_v59, %v5115_v44  ;;  %v1991_v26 = vpop.f32.mrf.mxu0 }
 0x19d   : > { %v3651_v20 = vpop.f32.mrf.mxu1 }
 0x19e   : > { %5749 = vst [vmem:[#allocation18_spill] sm:$0xff] %v5214_v0  ;;  %v5217_v12 = vadd.f32 %v1978_v42, %v1815_v54  ;;  %v1820_v32 = vadd.f32 %v3651_v20, %v5122_v57  ;;  %v3686_v30 = vpop.f32.mrf.mxu0 }
 0x19f   : > { %v1763_v55 = vpop.f32.mrf.mxu1 }
 0x1a0   : > { %5750 = vst [vmem:[#allocation22_spill] sm:$0xff] %v5217_v12  ;;  %v5220_v48 = vadd.f32 %v3685_v24, %v1820_v32  ;;  %v1818_v46 = vadd.f32 %v1763_v55, %v5125_v16  ;;  %v1994_v62 = vpop.f32.mrf.mxu0 }
 0x1a1   : > { %v3652_v10 = vpop.f32.mrf.mxu1 }
 0x1a2   : > { %5751 = vst [vmem:[#allocation27_spill] sm:$0xff] %v5220_v48  ;;  %v5223_v21 = vadd.f32 %v1991_v26, %v1818_v46  ;;  %v1821_v38 = vadd.f32 %v3652_v10, %v5129_v31  ;;  %v3689_v34 = vpop.f32.mrf.mxu0 }
 0x1a3   : > { %v1766_v44 = vpop.f32.mrf.mxu1 }
 0x1a4   : > { %5752 = vst [vmem:[#allocation8_spill] sm:$0xff] %v5223_v21  ;;  %v5226_v27 = vadd.f32 %v3686_v30, %v1821_v38  ;;  %v1819_v3 = vadd.f32 %v1766_v44, %v5133_v7  ;;  %v2007_v35 = vpop.f32.mrf.mxu0 }
 0x1a5   : > { %v3655_v57 = vpop.f32.mrf.mxu1 }
 0x1a6   : > { %5753 = vst [vmem:[#allocation13_spill] sm:$0xff] %v5226_v27  ;;  %v5229_v40 = vadd.f32 %v1994_v62, %v1819_v3  ;;  %v1824_v9 = vadd.f32 %v3655_v57, %v5136_v51  ;;  %v3690_v39 = vpop.f32.mrf.mxu0 }
 0x1a7   : > { %v1779_v16 = vpop.f32.mrf.mxu1 }
 0x1a8   : > { %5754 = vst [vmem:[#allocation15_spill] sm:$0xff] %v5229_v40  ;;  %v5232_v18 = vadd.f32 %v3689_v34, %v1824_v9  ;;  %v1822_v36 = vadd.f32 %v1779_v16, %v5139_v50  ;;  %v2010_v23 = vpop.f32.mrf.mxu0 }
 0x1a9   : > { %v3656_v31 = vpop.f32.mrf.mxu1 }
 0x1aa   : > { %5755 = vst [vmem:[#allocation17_spill] sm:$0xff] %v5232_v18  ;;  %v5235_v6 = vadd.f32 %v2007_v35, %v1822_v36  ;;  %v1825_v14 = vadd.f32 %v3656_v31, %v5142_v2  ;;  %v5238_v56 = vpop.f32.mrf.mxu0 }
 0x1ab   : > { %v1782_v7 = vpop.f32.mrf.mxu1 }
 0x1ac   : > { %5756 = vst [vmem:[#allocation20_spill] sm:$0xff] %v5235_v6  ;;  %v5240_v13 = vadd.f32 %v3690_v39, %v1825_v14  ;;  %v1823_v42 = vadd.f32 %v1782_v7, %v5145_v47  ;;  %v5243_v51 = vpop.f32.mrf.mxu0 }
 0x1ad   : > { %v3695_v43 = vpop.f32.mrf.mxu1 }
 0x1ae   : > { %5757 = vst [vmem:[#allocation25_spill] sm:$0xff] %v5240_v13  ;;  %v5245_v61 = vadd.f32 %v2010_v23, %v1823_v42  ;;  %v5247_v24 = vpop.f32.mrf.mxu0 }
 0x1af   : > { %v2107_v50 = vpop.f32.mrf.mxu1 }
 0x1b0   : > { %5758 = vst [vmem:[#allocation28_spill] sm:$0xff] %v5245_v61  ;;  %v5249_v59 = vpop.f32.mrf.mxu0 }
 0x1b1   : > { %v3696_v54 = vpop.f32.mrf.mxu1 }
 0x1b2   : > { %v5251_v26 = vpop.f32.mrf.mxu0 }
 0x1b3   : > { %v5253_v2 = vpop.f32.mrf.mxu1 }
 0x1b4   : > { %v5255_v20 = vpop.f32.mrf.mxu0 }
 0x1b5   : > { %v5257_v32 = vpop.f32.mrf.mxu1 }
 0x1b6   : > { %v5259_v47 = vpop.f32.mrf.mxu0 }
 0x1b7   : > { %v5261_v30 = vpop.f32.mrf.mxu1 }
 0x1b8   : > { %v5263_v55 = vpop.f32.mrf.mxu0 }
 0x1b9   : > { %v5265_v46 = vpop.f32.mrf.mxu1 }
 0x1ba   : > { %v5267_v62 = vpop.f32.mrf.mxu0 }
 0x1bb   : > { %v5269_v10 = vpop.f32.mrf.mxu1 }
 0x1bc   : > { %v5271_v38 = vpop.f32.mrf.mxu0 }
 0x1bd   : > { %v5273_v34 = vpop.f32.mrf.mxu1 }
 0x1be   : > { %v5275_v44 = vpop.f32.mrf.mxu0 }
 0x1bf   : > { %v5277_v3 = vpop.f32.mrf.mxu1 }
 0x1c0   : > { %v5279_v35 = vpop.f32.mrf.mxu0 }
 0x1c1   : > { %v5281_v57 = vpop.f32.mrf.mxu1 }
 0x1c2   : > { %v5283_v9 = vpop.f32.mrf.mxu0 }
 0x1c3   : > { %v5285_v39 = vpop.f32.mrf.mxu1 }
 0x1c4   : > { %v5287_v16 = vpop.f32.mrf.mxu0 }
 0x1c5   : > { %v5289_v36 = vpop.f32.mrf.mxu1 }
 0x1c6   : > { %v5291_v23 = vpop.f32.mrf.mxu0 }
 0x1c7   : > { %v5293_v31 = vpop.f32.mrf.mxu1 }
 0x1c8   : > { %v5295_v14 = vpop.f32.mrf.mxu0 }
 0x1c9   : > { %v5297_v7 = vpop.f32.mrf.mxu1 }
 0x1ca   : > { %v5299_v42 = vpop.f32.mrf.mxu0 }
 0x1cb   : > { %5759 = vst [vmem:[#allocation5_spill] sm:$0xff] %v5299_v42  ;;  %v5301_v61 = vpop.f32.mrf.mxu1 }
 0x1cc   : > { %v5303_v13 = vpop.f32.mrf.mxu0 }
 0x1cd   : > { %5760 = vst [vmem:[#allocation23_spill] sm:$0xff] %v5303_v13  ;;  %v5305_v6 = vpop.f32.mrf.mxu1 }
 0x1ce   : > { %v5307_v18 = vpop.f32.mrf.mxu0 }
 0x1cf   : > { %5761 = vst [vmem:[#allocation19_spill] sm:$0xff] %v5307_v18  ;;  %v5309_v40 = vpop.f32.mrf.mxu1 }
 0x1d0   : > { %v5311_v27 = vpop.f32.mrf.mxu0 }
 0x1d1   : > { %5762 = vst [vmem:[#allocation21_spill] sm:$0xff] %v5311_v27  ;;  %v5313_v21 = vpop.f32.mrf.mxu1 }
 0x1d2   : > { %5763 = vst [vmem:[#allocation24_spill] sm:$0xff] %v5313_v21  ;;  %v5315_v48 = vpop.f32.mrf.mxu0 }
 0x1d3   : > { %5764 = vst [vmem:[#allocation26_spill] sm:$0xff] %v5315_v48  ;;  %v5317_v12 = vpop.f32.mrf.mxu1 }
 0x1d4   : > { %5765 = vst [vmem:[#allocation11_spill] sm:$0xff] %v5317_v12  ;;  %v5319_v0 = vpop.f32.mrf.mxu0 }
 0x1d5   : > { %5766 = vst [vmem:[#allocation6_spill] sm:$0xff] %v5319_v0  ;;  %v5321_v52 = vpop.f32.mrf.mxu1 }
 0x1d6   : > { %5767 = vst [vmem:[#allocation7_spill] sm:$0xff] %v5321_v52  ;;  %v5323_v1 = vpop.f32.mrf.mxu0 }
 0x1d7   : > { %5768 = vst [vmem:[#allocation9_spill] sm:$0xff] %v5323_v1  ;;  %v5325_v49 = vpop.f32.mrf.mxu1 }
 0x1d8   : > { %5769 = vst [vmem:[#allocation29_spill] sm:$0xff] %v5325_v49  ;;  %v5327_v13 = vpop.f32.mrf.mxu0 }
 0x1d9   : > { %5770 = vst [vmem:[#allocation30_spill] sm:$0xff] %v5327_v13  ;;  %v5329_v18 = vpop.f32.mrf.mxu1 }
 0x1da   : > { %5771 = vst [vmem:[#allocation31_spill] sm:$0xff] %v5329_v18  ;;  %v5331_v53 = vpop.f32.mrf.mxu0 }
 0x1db   : > { %5772 = vst [vmem:[#allocation32_spill] sm:$0xff] %v5331_v53  ;;  %v5333_v27 = vpop.f32.mrf.mxu1 }
 0x1dc   : > { %5773 = vst [vmem:[#allocation33_spill] sm:$0xff] %v5333_v27  ;;  %v5335_v21 = vpop.f32.mrf.mxu0 }
 0x1dd   : > { %5774 = vst [vmem:[#allocation34_spill] sm:$0xff] %v5335_v21  ;;  %v5337_v48 = vpop.f32.mrf.mxu1 }
 0x1de   : > { %5775 = vst [vmem:[#allocation35_spill] sm:$0xff] %v5337_v48  ;;  %v5339_v12 = vpop.f32.mrf.mxu0 }
 0x1df   : > { %5776 = vst [vmem:[#allocation36_spill] sm:$0xff] %v5339_v12  ;;  %v5341_v0 = vpop.f32.mrf.mxu1  ;;  %v2236_v12 = vadd.f32 %v3695_v43, %v5148_v29  ;;  %v2235_v29 = vadd.f32 %v5253_v2, %v5157_v4  ;;  %v2238_v4 = vadd.f32 %v5261_v30, %v5163_v5 }
 0x1e0   : > { %5777 = vst [vmem:[#allocation37_spill] sm:$0xff] %v5341_v0  ;;  %v5343_v52 = vpop.f32.mrf.mxu0 }
 0x1e1   : > { %5778 = vst [vmem:[#allocation38_spill] sm:$0xff] %v5343_v52  ;;  %v5345_v1 = vpop.f32.mrf.mxu1 }
 0x1e2   : > { %5779 = vst [vmem:[#allocation39_spill] sm:$0xff] %v5345_v1  ;;  %v5347_v49 = vpop.f32.mrf.mxu0  ;;  %v2234_v1 = vadd.f32 %v2107_v50, %v5151_v15  ;;  %v5376_v15 = vld [vmem:[%s5622_s2] ss:$0 sm:$0xff] }
 0x1e3   : > { %5780 = vst [vmem:[#allocation40_spill] sm:$0xff] %v5347_v49  ;;  %v5349_v13 = vpop.f32.mrf.mxu1 }
 0x1e4   : > { %5781 = vst [vmem:[#allocation41_spill] sm:$0xff] %v5349_v13  ;;  %v5351_v18 = vpop.f32.mrf.mxu0  ;;  %v2440_v42 = vadd.f32 %v5243_v51, %v2234_v1  ;;  %v2240_v1 = vadd.f32 %v5257_v32, %v5160_v41  ;;  %v2441_v51 = vadd.f32 %v5249_v59, %v2235_v29  ;;  %v2241_v41 = vadd.f32 %v5265_v46, %v5166_v45 }
 0x1e5   : > { %5782 = vst [vmem:[#allocation42_spill] sm:$0xff] %v5351_v18  ;;  %v5353_v53 = vpop.f32.mrf.mxu1  ;;  %v2442_v18 = vadd.f32 %v5238_v56, %v2236_v12  ;;  %v2444_v29 = vadd.f32 %v5255_v20, %v2238_v4 }
 0x1e6   : > { %5783 = vst [vmem:[#allocation43_spill] sm:$0xff] %v5353_v53  ;;  %v5355_v27 = vpop.f32.mrf.mxu0  ;;  %v2237_v53 = vadd.f32 %v3696_v54, %v5154_v58  ;;  %v2446_v59 = vadd.f32 %v5251_v26, %v2240_v1 }
 0x1e7   : > { %5784 = vst [vmem:[#allocation44_spill] sm:$0xff] %v5355_v27  ;;  %v5357_v21 = vpop.f32.mrf.mxu1 }
 0x1e8   : > { %v5360_v0 = vpop.f32.mrf.mxu0  ;;  %v2443_v12 = vadd.f32 %v5247_v24, %v2237_v53 }
 0x1e9   : > { %5785 = vst [vmem:[#allocation45_spill] sm:$0xff] %v5360_v0  ;;  %v5362_v52 = vpop.f32.mrf.mxu1 }
 0x1ea   : > { %v3797_v49 = vpop.f32.mrf.mxu0 }
 0x1eb   : > { %v5365_v48 = vpop.f32.mrf.mxu1 }
 0x1ec   : > { %v2753_v13 = vpop.f32.mrf.mxu0 }
 0x1ed   : > { %v3763_v27 = vpop.f32.mrf.mxu1 }
 0x1ee   : > { %v2670_v43 = vadd.f32 %v3763_v27, %v2442_v18  ;;  %v3798_v0 = vpop.f32.mrf.mxu0  ;;  %v5386_v27 = vld [vmem:[%s5623_s3] ss:$0 sm:$0xff] }
 0x1ef   : > { %v2541_v50 = vpop.f32.mrf.mxu1 }
 0x1f0   : > { %v2882_v58 = vadd.f32 %v3797_v49, %v2670_v43  ;;  %v2668_v56 = vadd.f32 %v2541_v50, %v2440_v42  ;;  %v2756_v54 = vpop.f32.mrf.mxu0 }
 0x1f1   : > { %v3764_v18 = vpop.f32.mrf.mxu1 }
 0x1f2   : > { %v2921_v53 = vmul.f32 %v5376_v15, %v2882_v58  ;;  %v2880_v49 = vadd.f32 %v2753_v13, %v2668_v56  ;;  %v2671_v24 = vadd.f32 %v3764_v18, %v2443_v12  ;;  %v3801_v2 = vpop.f32.mrf.mxu0  ;;  %v2239_v13 = vadd.f32 %v5269_v10, %v5169_v8 }
 0x1f3   : > { %v2544_v32 = vpop.f32.mrf.mxu1 }
 0x1f4   : > { %v2960_v5 = vadd.f32 %v5386_v27, %v2921_v53  ;;  %v2919_v30 = vmul.f32 %v5376_v15, %v2880_v49  ;;  %v2883_v42 = vadd.f32 %v3798_v0, %v2671_v24  ;;  %v2669_v43 = vadd.f32 %v2544_v32, %v2441_v51  ;;  %v2769_v50 = vpop.f32.mrf.mxu0 }
 0x1f5   : > { %v3767_v12 = vpop.f32.mrf.mxu1  ;;  %v2447_v53 = vadd.f32 %v5259_v47, %v2241_v41  ;;  %v2244_v0 = vadd.f32 %v5273_v34, %v5172_v11  ;;  %v2445_v47 = vadd.f32 %v5263_v55, %v2239_v13 }
 0x1f6   : > { %v2992_v58 = vmax.f32 %v2960_v5, 0.0  ;;  %v2958_v56 = vadd.f32 %v5386_v27, %v2919_v30  ;;  %v2922_v45 = vmul.f32 %v5376_v15, %v2883_v42  ;;  %v2881_v46 = vadd.f32 %v2756_v54, %v2669_v43  ;;  %v3802_v18 = vpop.f32.mrf.mxu0 }
 0x1f7   : > { %v2674_v51 = vadd.f32 %v3767_v12, %v2446_v59  ;;  %v2557_v26 = vpop.f32.mrf.mxu1  ;;  %v2450_v5 = vadd.f32 %v5267_v62, %v2244_v0  ;;  %v2242_v30 = vadd.f32 %v5277_v3, %v5175_v60  ;;  %v2245_v42 = vadd.f32 %v5281_v57, %v5178_v33 }
 0x1f8   : > { %3024 = vst [vmem:[%s5405_s13 + $0x10] sm:$0xff] %v2992_v58  ;;  %v2990_v8 = vmax.f32 %v2958_v56, 0.0  ;;  %v2961_v20 = vadd.f32 %v5386_v27, %v2922_v45  ;;  %v2920_v10 = vmul.f32 %v5376_v15, %v2881_v46  ;;  %v2672_v1 = vadd.f32 %v2557_v26, %v2444_v29  ;;  %v2772_v54 = vpop.f32.mrf.mxu0 }
 0x1f9   : > { %v2886_v4 = vadd.f32 %v3801_v2, %v2674_v51  ;;  %v3768_v49 = vpop.f32.mrf.mxu1  ;;  %v2243_v12 = vadd.f32 %v5285_v39, %v5181_v17  ;;  %v2448_v45 = vadd.f32 %v5271_v38, %v2242_v30  ;;  %v2451_v46 = vadd.f32 %v5275_v44, %v2245_v42 }
 0x1fa   : > { %3022 = vst [vmem:[%s5405_s13] sm:$0xff] %v2990_v8  ;;  %v2993_v11 = vmax.f32 %v2961_v20, 0.0  ;;  %v2959_v34 = vadd.f32 %v5386_v27, %v2920_v10  ;;  %v2884_v24 = vadd.f32 %v2769_v50, %v2672_v1  ;;  %v2675_v41 = vadd.f32 %v3768_v49, %v2447_v53  ;;  %v3805_v32 = vpop.f32.mrf.mxu0 }
 0x1fb   : > { %v2925_v55 = vmul.f32 %v5376_v15, %v2886_v4  ;;  %v2560_v2 = vpop.f32.mrf.mxu1  ;;  %v2248_v17 = vadd.f32 %v5289_v36, %v5184_v19  ;;  %v2449_v20 = vadd.f32 %v5279_v35, %v2243_v12  ;;  %v2246_v38 = vadd.f32 %v5293_v31, %v5187_v25 }
 0x1fc   : > { %3025 = vst [vmem:[%s5405_s13 + $0x18] sm:$0xff] %v2993_v11  ;;  %v2991_v43 = vmax.f32 %v2959_v34, 0.0  ;;  %v2923_v59 = vmul.f32 %v5376_v15, %v2884_v24  ;;  %v2887_v29 = vadd.f32 %v3802_v18, %v2675_v41  ;;  %v2673_v50 = vadd.f32 %v2560_v2, %v2445_v47  ;;  %v2785_v13 = vpop.f32.mrf.mxu0 }
 0x1fd   : > { %v2964_v62 = vadd.f32 %v5386_v27, %v2925_v55  ;;  %v3771_v58 = vpop.f32.mrf.mxu1  ;;  %v2454_v4 = vadd.f32 %v5283_v9, %v2248_v17  ;;  %v2452_v41 = vadd.f32 %v5287_v16, %v2246_v38  ;;  %v5787_v17 = vld [vmem:[#allocation12_spill] sm:$0xff] }
 0x1fe   : > { %3023 = vst [vmem:[%s5405_s13 + $0x8] sm:$0xff] %v2991_v43  ;;  %v2962_v60 = vadd.f32 %v5386_v27, %v2923_v59  ;;  %v2926_v33 = vmul.f32 %v5376_v15, %v2887_v29  ;;  %v2885_v3 = vadd.f32 %v2772_v54, %v2673_v50  ;;  %v2678_v57 = vadd.f32 %v3771_v58, %v2450_v5  ;;  %v3806_v56 = vpop.f32.mrf.mxu0 }
 0x1ff   : > { %v2996_v39 = vmax.f32 %v2964_v62, 0.0  ;;  %v2573_v18 = vpop.f32.mrf.mxu1  ;;  %v2247_v5 = vadd.f32 %v5301_v61, %v5193_v28  ;;  %v2252_v29 = vadd.f32 %v5305_v6, %v5196_v22  ;;  %v2250_v22 = vadd.f32 %v5309_v40, %v5199_v63 }
 0x200   : > { %v2994_v53 = vmax.f32 %v2962_v60, 0.0  ;;  %v2965_v0 = vadd.f32 %v5386_v27, %v2926_v33  ;;  %v2924_v51 = vmul.f32 %v5376_v15, %v2885_v3  ;;  %v2890_v26 = vadd.f32 %v3805_v32, %v2678_v57  ;;  %v2788_v8 = vpop.f32.mrf.mxu0 }
 0x201   : > { %3028 = vst [vmem:[%s5405_s13 + $0x30] sm:$0xff] %v2996_v39  ;;  %v2676_v44 = vadd.f32 %v2573_v18, %v2448_v45  ;;  %v3772_v10 = vpop.f32.mrf.mxu1  ;;  %v2249_v32 = vadd.f32 %v5297_v7, %v5190_v37  ;;  %v2453_v62 = vadd.f32 %v5295_v14, %v2247_v5  ;;  %v5786_v45 = vld [vmem:[#allocation5_spill] sm:$0xff]  ;;  %v5788_v39 = vld [vmem:[#allocation24_spill] sm:$0xff] }
 0x202   : > { %3026 = vst [vmem:[%s5405_s13 + $0x20] sm:$0xff] %v2994_v53  ;;  %v2997_v19 = vmax.f32 %v2965_v0, 0.0  ;;  %v2963_v36 = vadd.f32 %v5386_v27, %v2924_v51  ;;  %v2929_v1 = vmul.f32 %v5376_v15, %v2890_v26  ;;  %v2679_v54 = vadd.f32 %v3772_v10, %v2451_v46  ;;  %v3809_v47 = vpop.f32.mrf.mxu0  ;;  %v5789_v26 = vld [vmem:[#allocation23_spill] sm:$0xff] }
 0x203   : > { %v2888_v49 = vadd.f32 %v2785_v13, %v2676_v44  ;;  %v2576_v11 = vpop.f32.mrf.mxu1  ;;  %v2455_v12 = vadd.f32 %v5291_v23, %v2249_v32  ;;  %v2458_v46 = vadd.f32 %v5786_v45, %v2252_v29  ;;  %v2253_v23 = vadd.f32 %v5788_v39, %v5787_v17  ;;  %v5802_v39 = vld [vmem:[#allocation22_spill] sm:$0xff] }
 0x204   : > { %3029 = vst [vmem:[%s5405_s13 + $0x38] sm:$0xff] %v2997_v19  ;;  %v2995_v35 = vmax.f32 %v2963_v36, 0.0  ;;  %v2968_v25 = vadd.f32 %v5386_v27, %v2929_v1  ;;  %v2891_v31 = vadd.f32 %v3806_v56, %v2679_v54  ;;  %v2677_v34 = vadd.f32 %v2576_v11, %v2449_v20  ;;  %v2801_v24 = vpop.f32.mrf.mxu0  ;;  %v5790_v54 = vld [vmem:[#allocation19_spill] sm:$0xff] }
 0x205   : > { %v2927_v9 = vmul.f32 %v5376_v15, %v2888_v49  ;;  %v3775_v30 = vpop.f32.mrf.mxu1  ;;  %v5792_v49 = vld [vmem:[#allocation11_spill] sm:$0xff] }
 0x206   : > { %3027 = vst [vmem:[%s5405_s13 + $0x28] sm:$0xff] %v2995_v35  ;;  %v3000_v42 = vmax.f32 %v2968_v25, 0.0  ;;  %v2930_v55 = vmul.f32 %v5376_v15, %v2891_v31  ;;  %v2889_v2 = vadd.f32 %v2788_v8, %v2677_v34  ;;  %v2682_v43 = vadd.f32 %v3775_v30, %v2454_v4  ;;  %v3810_v59 = vpop.f32.mrf.mxu0  ;;  %v5791_v4 = vld [vmem:[#allocation10_spill] sm:$0xff]  ;;  %v5794_v25 = vld [vmem:[#allocation7_spill] sm:$0xff] }
 0x207   : > { %v2966_v16 = vadd.f32 %v5386_v27, %v2927_v9  ;;  %v2589_v50 = vpop.f32.mrf.mxu1  ;;  %v2456_v8 = vadd.f32 %v5789_v26, %v2250_v22  ;;  %v2251_v11 = vadd.f32 %v5792_v49, %v5791_v4  ;;  %v5793_v35 = vld [vmem:[#allocation14_spill] sm:$0xff]  ;;  %v5800_v22 = vld [vmem:[#allocation31_spill] sm:$0xff] }
 0x208   : > { %3032 = vst [vmem:[%s5405_s13 + $0x50] sm:$0xff] %v3000_v42  ;;  %v2969_v37 = vadd.f32 %v5386_v27, %v2930_v55  ;;  %v2928_v28 = vmul.f32 %v5376_v15, %v2889_v2  ;;  %v2894_v61 = vadd.f32 %v3809_v47, %v2682_v43  ;;  %v2680_v7 = vadd.f32 %v2589_v50, %v2452_v41  ;;  %v2804_v13 = vpop.f32.mrf.mxu0  ;;  %v5795_v42 = vld [vmem:[#allocation16_spill] sm:$0xff]  ;;  %v5796_v55 = vld [vmem:[#allocation29_spill] sm:$0xff]  ;;  %v5806_v49 = vld [vmem:[#allocation27_spill] sm:$0xff] }
 0x209   : > { %v2998_v6 = vmax.f32 %v2966_v16, 0.0  ;;  %v3776_v58 = vpop.f32.mrf.mxu1  ;;  %v2459_v47 = vadd.f32 %v5790_v54, %v2253_v23  ;;  %v2256_v31 = vadd.f32 %v5794_v25, %v5793_v35  ;;  %v2254_v2 = vadd.f32 %v5796_v55, %v5795_v42  ;;  %v5803_v23 = vld [vmem:[#allocation33_spill] sm:$0xff]  ;;  %v5808_v25 = vld [vmem:[#allocation8_spill] sm:$0xff] }
 0x20a   : > { %v3001_v60 = vmax.f32 %v2969_v37, 0.0  ;;  %v2967_v33 = vadd.f32 %v5386_v27, %v2928_v28  ;;  %v2933_v3 = vmul.f32 %v5376_v15, %v2894_v61  ;;  %v2892_v57 = vadd.f32 %v2801_v24, %v2680_v7  ;;  %v3813_v56 = vpop.f32.mrf.mxu0  ;;  %v5797_v61 = vld [vmem:[#allocation21_spill] sm:$0xff] }
 0x20b   : > { %3030 = vst [vmem:[%s5405_s13 + $0x40] sm:$0xff] %v2998_v6  ;;  %v2683_v14 = vadd.f32 %v3776_v58, %v2455_v12  ;;  %v2592_v18 = vpop.f32.mrf.mxu1  ;;  %v2457_v7 = vadd.f32 %v5797_v61, %v2251_v11  ;;  %v5807_v11 = vld [vmem:[#allocation35_spill] sm:$0xff]  ;;  %v5810_v55 = vld [vmem:[#allocation13_spill] sm:$0xff] }
 0x20c   : > { %3033 = vst [vmem:[%s5405_s13 + $0x58] sm:$0xff] %v3001_v60  ;;  %v2999_v63 = vmax.f32 %v2967_v33, 0.0  ;;  %v2972_v40 = vadd.f32 %v5386_v27, %v2933_v3  ;;  %v2931_v53 = vmul.f32 %v5376_v15, %v2892_v57  ;;  %v2681_v0 = vadd.f32 %v2592_v18, %v2453_v62  ;;  %v2817_v51 = vpop.f32.mrf.mxu0  ;;  %v5799_v62 = vld [vmem:[#allocation18_spill] sm:$0xff] }
 0x20d   : > { %v2895_v20 = vadd.f32 %v3810_v59, %v2683_v14  ;;  %v3779_v38 = vpop.f32.mrf.mxu1  ;;  %v2257_v6 = vadd.f32 %v5800_v22, %v5799_v62  ;;  %v2255_v14 = vadd.f32 %v5803_v23, %v5802_v39  ;;  %v2260_v35 = vadd.f32 %v5807_v11, %v5806_v49  ;;  %v5814_v22 = vld [vmem:[#allocation15_spill] sm:$0xff]  ;;  %v5817_v23 = vld [vmem:[#allocation17_spill] sm:$0xff]  ;;  %v5821_v11 = vld [vmem:[#allocation20_spill] sm:$0xff] }
 0x20e   : > { %3031 = vst [vmem:[%s5405_s13 + $0x48] sm:$0xff] %v2999_v63  ;;  %v3004_v44 = vmax.f32 %v2972_v40, 0.0  ;;  %v2970_v10 = vadd.f32 %v5386_v27, %v2931_v53  ;;  %v2893_v19 = vadd.f32 %v2804_v13, %v2681_v0  ;;  %v2686_v36 = vadd.f32 %v3779_v38, %v2458_v46  ;;  %v3814_v1 = vpop.f32.mrf.mxu0  ;;  %v5798_v13 = vld [vmem:[#allocation26_spill] sm:$0xff] }
 0x20f   : > { %v2934_v34 = vmul.f32 %v5376_v15, %v2895_v20  ;;  %v2605_v24 = vpop.f32.mrf.mxu1  ;;  %v2462_v12 = vadd.f32 %v5798_v13, %v2256_v31  ;;  %v5801_v46 = vld [vmem:[#allocation6_spill] sm:$0xff]  ;;  %v5809_v31 = vld [vmem:[#allocation37_spill] sm:$0xff] }
 0x210   : > { %3036 = vst [vmem:[%s5405_s13 + $0x70] sm:$0xff] %v3004_v44  ;;  %v3002_v41 = vmax.f32 %v2970_v10, 0.0  ;;  %v2932_v32 = vmul.f32 %v5376_v15, %v2893_v19  ;;  %v2898_v5 = vadd.f32 %v3813_v56, %v2686_v36  ;;  %v2684_v9 = vadd.f32 %v2605_v24, %v2456_v8  ;;  %v2820_v30 = vpop.f32.mrf.mxu0  ;;  %v5804_v8 = vld [vmem:[#allocation9_spill] sm:$0xff] }
 0x211   : > { %v2973_v43 = vadd.f32 %v5386_v27, %v2934_v34  ;;  %v3780_v59 = vpop.f32.mrf.mxu1  ;;  %v2460_v17 = vadd.f32 %v5801_v46, %v2254_v2  ;;  %v2463_v20 = vadd.f32 %v5804_v8, %v2257_v6  ;;  %v2258_v34 = vadd.f32 %v5809_v31, %v5808_v25  ;;  %v5811_v2 = vld [vmem:[#allocation39_spill] sm:$0xff]  ;;  %v5815_v6 = vld [vmem:[#allocation41_spill] sm:$0xff] }
 0x212   : > { %3034 = vst [vmem:[%s5405_s13 + $0x60] sm:$0xff] %v3002_v41  ;;  %v2971_v29 = vadd.f32 %v5386_v27, %v2932_v32  ;;  %v2937_v16 = vmul.f32 %v5376_v15, %v2898_v5  ;;  %v2896_v50 = vadd.f32 %v2817_v51, %v2684_v9  ;;  %v2687_v37 = vadd.f32 %v3780_v59, %v2459_v47  ;;  %v3817_v28 = vpop.f32.mrf.mxu0  ;;  %v5805_v47 = vld [vmem:[#allocation30_spill] sm:$0xff]  ;;  %v5822_v25 = vld [vmem:[#allocation25_spill] sm:$0xff] }
 0x213   : > { %v3005_v58 = vmax.f32 %v2973_v43, 0.0  ;;  %v2608_v60 = vpop.f32.mrf.mxu1  ;;  %v2461_v4 = vadd.f32 %v5805_v47, %v2255_v14  ;;  %v2261_v43 = vadd.f32 %v5811_v2, %v5810_v55  ;;  %v5818_v14 = vld [vmem:[#allocation43_spill] sm:$0xff]  ;;  %v2265_v31 = vadd.f32 %v5362_v52, %v5822_v25 }
 0x214   : > { %v3003_v33 = vmax.f32 %v2971_v29, 0.0  ;;  %v2976_v3 = vadd.f32 %v5386_v27, %v2937_v16  ;;  %v2935_v57 = vmul.f32 %v5376_v15, %v2896_v50  ;;  %v2899_v56 = vadd.f32 %v3814_v1, %v2687_v37  ;;  %v2833_v45 = vpop.f32.mrf.mxu0 }
 0x215   : > { %3037 = vst [vmem:[%s5405_s13 + $0x78] sm:$0xff] %v3005_v58  ;;  %v2685_v18 = vadd.f32 %v2608_v60, %v2457_v7  ;;  %v3783_v63 = vpop.f32.mrf.mxu1  ;;  %v5812_v7 = vld [vmem:[#allocation32_spill] sm:$0xff]  ;;  %v2259_v58 = vadd.f32 %v5815_v6, %v5814_v22  ;;  %v5826_v22 = vld [vmem:[#allocation45_spill] sm:$0xff] }
 0x216   : > { %3035 = vst [vmem:[%s5405_s13 + $0x68] sm:$0xff] %v3003_v33  ;;  %v3008_v40 = vmax.f32 %v2976_v3, 0.0  ;;  %v2974_v53 = vadd.f32 %v5386_v27, %v2935_v57  ;;  %v2938_v0 = vmul.f32 %v5376_v15, %v2899_v56  ;;  %v2690_v51 = vadd.f32 %v3783_v63, %v2462_v12  ;;  %v3818_v26 = vpop.f32.mrf.mxu0  ;;  %v5813_v12 = vld [vmem:[#allocation34_spill] sm:$0xff] }
 0x217   : > { %v2897_v38 = vadd.f32 %v2820_v30, %v2685_v18  ;;  %v2621_v44 = vpop.f32.mrf.mxu1  ;;  %v2466_v13 = vadd.f32 %v5812_v7, %v2260_v35  ;;  %v2464_v62 = vadd.f32 %v5813_v12, %v2258_v34  ;;  %v2264_v18 = vadd.f32 %v5818_v14, %v5817_v23 }
 0x218   : > { %3040 = vst [vmem:[%s5405_s13 + $0x90] sm:$0xff] %v3008_v40  ;;  %v3006_v10 = vmax.f32 %v2974_v53, 0.0  ;;  %v2977_v19 = vadd.f32 %v5386_v27, %v2938_v0  ;;  %v2902_v36 = vadd.f32 %v3817_v28, %v2690_v51  ;;  %v2688_v1 = vadd.f32 %v2621_v44, %v2460_v17  ;;  %v2836_v54 = vpop.f32.mrf.mxu0  ;;  %v5816_v17 = vld [vmem:[#allocation36_spill] sm:$0xff] }
 0x219   : > { %v2936_v24 = vmul.f32 %v5376_v15, %v2897_v38  ;;  %v3784_v41 = vpop.f32.mrf.mxu1  ;;  %v2467_v39 = vadd.f32 %v5816_v17, %v2261_v43  ;;  %v2262_v35 = vadd.f32 %v5357_v21, %v5821_v11 }
 0x21a   : > { %3038 = vst [vmem:[%s5405_s13 + $0x80] sm:$0xff] %v3006_v10  ;;  %v3009_v32 = vmax.f32 %v2977_v19, 0.0  ;;  %v2941_v5 = vmul.f32 %v5376_v15, %v2902_v36  ;;  %v2900_v9 = vadd.f32 %v2833_v45, %v2688_v1  ;;  %v2691_v30 = vadd.f32 %v3784_v41, %v2463_v20  ;;  %v3821_v42 = vpop.f32.mrf.mxu0  ;;  %v5819_v20 = vld [vmem:[#allocation38_spill] sm:$0xff] }
 0x21b   : > { %v2975_v59 = vadd.f32 %v5386_v27, %v2936_v24  ;;  %v2624_v29 = vpop.f32.mrf.mxu1  ;;  %v2465_v38 = vadd.f32 %v5819_v20, %v2259_v58 }
 0x21c   : > { %3041 = vst [vmem:[%s5405_s13 + $0x98] sm:$0xff] %v3009_v32  ;;  %v2980_v16 = vadd.f32 %v5386_v27, %v2941_v5  ;;  %v2939_v50 = vmul.f32 %v5376_v15, %v2900_v9  ;;  %v2903_v37 = vadd.f32 %v3818_v26, %v2691_v30  ;;  %v2689_v28 = vadd.f32 %v2624_v29, %v2461_v4  ;;  %v2849_v61 = vpop.f32.mrf.mxu0  ;;  %v5820_v4 = vld [vmem:[#allocation40_spill] sm:$0xff] }
 0x21d   : > { %v3007_v60 = vmax.f32 %v2975_v59, 0.0  ;;  %v3787_v33 = vpop.f32.mrf.mxu1  ;;  %v2470_v49 = vadd.f32 %v5820_v4, %v2264_v18  ;;  %v5823_v30 = vld [vmem:[#allocation28_spill] sm:$0xff] }
 0x21e   : > { %v3012_v3 = vmax.f32 %v2980_v16, 0.0  ;;  %v2978_v57 = vadd.f32 %v5386_v27, %v2939_v50  ;;  %v2942_v56 = vmul.f32 %v5376_v15, %v2903_v37  ;;  %v2901_v45 = vadd.f32 %v2836_v54, %v2689_v28  ;;  %v3822_v46 = vpop.f32.mrf.mxu0  ;;  %v5824_v16 = vld [vmem:[#allocation42_spill] sm:$0xff]  ;;  %v5825_v37 = vld [vmem:[#allocation44_spill] sm:$0xff] }
 0x21f   : > { %3039 = vst [vmem:[%s5405_s13 + $0x88] sm:$0xff] %v3007_v60  ;;  %v2694_v63 = vadd.f32 %v3787_v33, %v2466_v13  ;;  %v2637_v40 = vpop.f32.mrf.mxu1  ;;  %v2468_v50 = vadd.f32 %v5824_v16, %v2262_v35  ;;  %v2471_v28 = vadd.f32 %v5825_v37, %v2265_v31 }
 0x220   : > { %3044 = vst [vmem:[%s5405_s13 + $0xb0] sm:$0xff] %v3012_v3  ;;  %v3010_v53 = vmax.f32 %v2978_v57, 0.0  ;;  %v2981_v0 = vadd.f32 %v5386_v27, %v2942_v56  ;;  %v2940_v51 = vmul.f32 %v5376_v15, %v2901_v45  ;;  %v2692_v26 = vadd.f32 %v2637_v40, %v2464_v62  ;;  %v2852_v8 = vpop.f32.mrf.mxu0 }
 0x221   : > { %v2906_v44 = vadd.f32 %v3821_v42, %v2694_v63  ;;  %v3788_v10 = vpop.f32.mrf.mxu1  ;;  %v2263_v42 = vadd.f32 %v5365_v48, %v5823_v30 }
 0x222   : > { %3042 = vst [vmem:[%s5405_s13 + $0xa0] sm:$0xff] %v3010_v53  ;;  %v3013_v19 = vmax.f32 %v2981_v0, 0.0  ;;  %v2979_v36 = vadd.f32 %v5386_v27, %v2940_v51  ;;  %v2904_v1 = vadd.f32 %v2849_v61, %v2692_v26  ;;  %v2695_v54 = vadd.f32 %v3788_v10, %v2467_v39  ;;  %v3825_v47 = vpop.f32.mrf.mxu0 }
 0x223   : > { %v2945_v34 = vmul.f32 %v5376_v15, %v2906_v44  ;;  %v2640_v24 = vpop.f32.mrf.mxu1  ;;  %v2469_v6 = vadd.f32 %v5826_v22, %v2263_v42 }
 0x224   : > { %3045 = vst [vmem:[%s5405_s13 + $0xb8] sm:$0xff] %v3013_v19  ;;  %v3011_v41 = vmax.f32 %v2979_v36, 0.0  ;;  %v2943_v32 = vmul.f32 %v5376_v15, %v2904_v1  ;;  %v2907_v5 = vadd.f32 %v3822_v46, %v2695_v54  ;;  %v2693_v9 = vadd.f32 %v2640_v24, %v2465_v38  ;;  %v2865_v21 = vpop.f32.mrf.mxu0 }
 0x225   : > { %v2984_v55 = vadd.f32 %v5386_v27, %v2945_v34  ;;  %v3791_v2 = vpop.f32.mrf.mxu1 }
 0x226   : > { %3043 = vst [vmem:[%s5405_s13 + $0xa8] sm:$0xff] %v3011_v41  ;;  %v2982_v52 = vadd.f32 %v5386_v27, %v2943_v32  ;;  %v2946_v43 = vmul.f32 %v5376_v15, %v2907_v5  ;;  %v2905_v59 = vadd.f32 %v2852_v8, %v2693_v9  ;;  %v2698_v29 = vadd.f32 %v3791_v2, %v2470_v49  ;;  %v3826_v33 = vpop.f32.mrf.mxu0 }
 0x227   : > { %v3016_v61 = vmax.f32 %v2984_v55, 0.0  ;;  %v2653_v7 = vpop.f32.mrf.mxu1 }
 0x228   : > { %v3014_v48 = vmax.f32 %v2982_v52, 0.0  ;;  %v2985_v13 = vadd.f32 %v5386_v27, %v2946_v43  ;;  %v2944_v12 = vmul.f32 %v5376_v15, %v2905_v59  ;;  %v2910_v62 = vadd.f32 %v3825_v47, %v2698_v29  ;;  %v2868_v40 = vpop.f32.mrf.mxu0 }
 0x229   : > { %3048 = vst [vmem:[%s5405_s13 + $0xd0] sm:$0xff] %v3016_v61  ;;  %v2696_v58 = vadd.f32 %v2653_v7, %v2468_v50  ;;  %v3792_v60 = vpop.f32.mrf.mxu1 }
 0x22a   : > { %3046 = vst [vmem:[%s5405_s13 + $0xc0] sm:$0xff] %v3014_v48  ;;  %v3017_v3 = vmax.f32 %v2985_v13, 0.0  ;;  %v2983_v57 = vadd.f32 %v5386_v27, %v2944_v12  ;;  %v2949_v56 = vmul.f32 %v5376_v15, %v2910_v62  ;;  %v2699_v45 = vadd.f32 %v3792_v60, %v2471_v28 }
 0x22b   : > { %v2908_v46 = vadd.f32 %v2865_v21, %v2696_v58  ;;  %v2656_v17 = vpop.f32.mrf.mxu1 }
 0x22c   : > { %3049 = vst [vmem:[%s5405_s13 + $0xd8] sm:$0xff] %v3017_v3  ;;  %v3015_v39 = vmax.f32 %v2983_v57, 0.0  ;;  %v2988_v23 = vadd.f32 %v5386_v27, %v2949_v56  ;;  %v2911_v14 = vadd.f32 %v3826_v33, %v2699_v45  ;;  %v2697_v18 = vadd.f32 %v2656_v17, %v2469_v6 }
 0x22d   : > { %v2947_v63 = vmul.f32 %v5376_v15, %v2908_v46 }
 0x22e   : > { %3047 = vst [vmem:[%s5405_s13 + $0xc8] sm:$0xff] %v3015_v39  ;;  %v3020_v53 = vmax.f32 %v2988_v23, 0.0  ;;  %v2950_v0 = vmul.f32 %v5376_v15, %v2911_v14  ;;  %v2909_v51 = vadd.f32 %v2868_v40, %v2697_v18 }
 0x22f   : > { %v2986_v26 = vadd.f32 %v5386_v27, %v2947_v63 }
 0x230   : > { %3052 = vst [vmem:[%s5405_s13 + $0xf0] sm:$0xff] %v3020_v53  ;;  %v2989_v8 = vadd.f32 %v5386_v27, %v2950_v0  ;;  %v2948_v20 = vmul.f32 %v5376_v15, %v2909_v51 }
 0x231   : > { %v3018_v38 = vmax.f32 %v2986_v26, 0.0 }
 0x232   : > { %v3021_v44 = vmax.f32 %v2989_v8, 0.0  ;;  %v2987_v10 = vadd.f32 %v5386_v27, %v2948_v20 }
 0x233   : > { %3050 = vst [vmem:[%s5405_s13 + $0xe0] sm:$0xff] %v3018_v38 }
 0x234   : > { %3053 = vst [vmem:[%s5405_s13 + $0xf8] sm:$0xff] %v3021_v44  ;;  %v3019_v19 = vmax.f32 %v2987_v10, 0.0 }
 0x236   : > { %3051 = vst [vmem:[%s5405_s13 + $0xe8] sm:$0xff] %v3019_v19 }
 0x237   : > { %3912 = shalt.err (!%p3909_p3)
}
 0x238   : > { %s3913_s6 = scalar_lea.hbm %s5572_s27, 4096  ;;  %s3917_s9 = scalar_lea.hbm %s5624_s4, 8192 }
 0x239   : > { %p3914_p4 = scmp.ne.s32.totalorder %s5572_s27, %s3913_s6  ;;  %p3918_p9 = scmp.lt.s32.totalorder %s5572_s27, %s5624_s4 }
 0x23a   : > { %p3919_p10 = scmp.lt.s32.totalorder %s3917_s9, %s3913_s6 }
 0x23b   : > { %p3915_p7 = pnand %p3914_p4, %p4027_p5 }
 0x23c   : > { %p3920_p11 = por %p3919_p10, %p3918_p9 }
 0x23d   : > { %p3916_p8 = pneg %p3915_p7 }
 0x23f   : > { %p3921_p12 = pnand %p3920_p11, %p3916_p8 }
 0x241   : > { %3924 = shalt.err (!%p3921_p12)
}
 0x242   : > { %s3962_s12 = smov 128   ;;  %s3963_s13 = smov 8  }
 0x243   : > { %3840 = dma.vmem_to_hbm [thread:$0]  (%p4027_p5), %s5574_s20, 4096, %s5572_s27, %s5580_s19, %s3962_s12, %s3962_s12, %s3963_s13  }
 0x244 PF: > { %p3846_p13 = scmp.ge.s32.totalorder %s3959_s18, 2  ;;  %s3083_s14 = sand.u32 1, %s3947_s15  }
 0x245   : > { %s3084_s22 = scalar_lea.sflag [#allocation3], %s3083_s14 }
 0x246   : > { %p3843_p0 = pnand %p3846_p13, %p4031_p6 }
 0x248   : > { %p3844_p1 = pneg %p3843_p0 }
 0x24a   : > { %3942 = dma.done.wait (%p3844_p1), %s3084_s22, 4096  }
 0x24b   : > { %3944 = vsyncadd (%p3844_p1), %s3084_s22, 4294963200  ;;  %p14_p2 = scmp.ge.s32.totalorder %s4014_s21, 4   ;;  %s5827_s15 = smov %s3951_s16 }
 0x24c   : > { %s5828_s16 = smov %s3955_s17  ;;  %s5829_s17 = smov %s4025_s24 }
 0x24d   : > { %s5830_s18 = smov %s4014_s21  ;;  %16 = sbr.rel (!%p14_p2) target bundleno = 3 (0x3), region = 79 }
 0x252   :  { %3089 = vsyncpa [#allocation3], 1 }
 0x253   :  { %3091 = vsyncpa [#allocation3 + $0x1], 1 }

</bundles_post_ra>
